<compile_context>
chip_gen: v6e
topology: v6e:2x2x1
jax: 0.10.0
libtpu: 0.0.40
codegen_flags: <defaults>
</compile_context>

<pallas_src>
import functools

import jax
import jax.numpy as jnp
from jax.experimental import pallas as pl
from jax.experimental.pallas import tpu as pltpu


# ----------------------------------------------------------------------------
# In-kernel helpers
# ----------------------------------------------------------------------------
def _fill_slab_from_nchw(slab_ref, x_ref, *, B, Cin, H, W):
    """Build the kh-folded, H-padded conv slab from an NCHW input block.

    slab_ref : (B*H, 3*Cin*W) f32 scratch; row (b*H + h), lane
               kh*Cin*W + c*W + wp holds x[b, c, h+kh-1, wp] (0 outside H).
    x_ref    : (B, Cin, H, W) f32 input block.
    """
    K1 = Cin * W
    zrow = jnp.zeros((1, K1), jnp.float32)
    for b in range(B):
        r0 = b * H
        # Halo rows of the kh=0 / kh=2 tap blocks (H zero-padding).
        slab_ref[r0:r0 + 1, 0:K1] = zrow
        slab_ref[r0 + H - 1:r0 + H, 2 * K1:3 * K1] = zrow
        for c in range(Cin):
            xc = x_ref[b, c, :, :]                                  # (H, W) f32
            # kh = 0 tap (needs input row h-1): rows 1..H-1.
            slab_ref[r0 + 1:r0 + H, c * W:(c + 1) * W] = xc[0:H - 1]
            # kh = 1 tap (row h): all rows.
            slab_ref[r0:r0 + H, K1 + c * W:K1 + (c + 1) * W] = xc
            # kh = 2 tap (row h+1): rows 0..H-2.
            slab_ref[r0:r0 + H - 1, 2 * K1 + c * W:2 * K1 + (c + 1) * W] = xc[1:H]


def _fill_slab_from_flat(slab_ref, a, *, B, H, K):
    """Build the kh-folded slab from an already lane-flat activation value.

    slab_ref : (B*H, 3*K) f32 scratch.
    a        : (B*H, K) f32 value (affine / relu already applied).
    """
    zrow = jnp.zeros((1, K), jnp.float32)
    for b in range(B):
        r0 = b * H
        ab = a[r0:r0 + H]                                           # (H, K)
        slab_ref[r0:r0 + 1, 0:K] = zrow
        slab_ref[r0 + 1:r0 + H, 0:K] = ab[0:H - 1]
        slab_ref[r0:r0 + H, K:2 * K] = ab
        slab_ref[r0:r0 + H - 1, 2 * K:3 * K] = ab[1:H]
        slab_ref[r0 + H - 1:r0 + H, 2 * K:3 * K] = zrow


def _store_nchw(out_ref, z, *, B, Cout, H, W):
    """z : (B*H, Cout*W) f32 lane-flat -> out_ref (B, Cout, H, W)."""
    for b in range(B):
        zb = z[b * H:(b + 1) * H]                                   # (H, Cout*W)
        for d in range(Cout):
            out_ref[b, d, :, :] = zb[:, d * W:(d + 1) * W]


def _accumulate_stats(stats_ref, acc):
    """stats_ref (2, K): row 0 accumulates sum(acc), row 1 sum(acc^2)."""
    @pl.when(pl.program_id(0) == 0)
    def _():
        stats_ref[...] = jnp.zeros_like(stats_ref)
    stats_ref[0:1, :] = stats_ref[0:1, :] + jnp.sum(acc, axis=0, keepdims=True)
    stats_ref[1:2, :] = stats_ref[1:2, :] + jnp.sum(acc * acc, axis=0, keepdims=True)


# ----------------------------------------------------------------------------
# Kernels
# ----------------------------------------------------------------------------
def _conv1_bn_kernel(x_ref, w_ref, y_ref, stats_ref, slab_ref,
                     *, B, Cin, Cout, H, W):
    """conv1 (3x3, pad 1, bias skipped: cancels in BN), BN1 partial stats.

    x_ref    : (B, Cin, H, W) f32          NCHW input block
    w_ref    : (3*Cin*W, Cout*W) bf16      banded, kh-folded weights
    y_ref    : (B, H, Cout*W) bf16         lane-flat raw conv output
    stats_ref: (2, Cout*W) f32             accumulated per-lane sum / sumsq
    slab_ref : (B*H, 3*Cin*W) f32          kh-folded im2col slab scratch
    """
    _fill_slab_from_nchw(slab_ref, x_ref, B=B, Cin=Cin, H=H, W=W)
    acc = jnp.dot(slab_ref[...].astype(jnp.bfloat16), w_ref[...],
                  preferred_element_type=jnp.float32)               # (B*H, Cout*W)
    y_ref[...] = acc.reshape(B, H, Cout * W).astype(jnp.bfloat16)
    _accumulate_stats(stats_ref, acc)


def _conv2_bn_kernel(y1_ref, sc_ref, sh_ref, w_ref, y_ref, stats_ref, slab_ref,
                     *, B, Cout, H, W):
    """BN1-affine + ReLU fused into conv2's input, conv2, BN2 partial stats."""
    K = Cout * W
    a = y1_ref[...].astype(jnp.float32).reshape(B * H, K)
    a = jnp.maximum(a * sc_ref[...] + sh_ref[...], 0.0)             # BN1 + ReLU
    _fill_slab_from_flat(slab_ref, a, B=B, H=H, K=K)
    acc = jnp.dot(slab_ref[...].astype(jnp.bfloat16), w_ref[...],
                  preferred_element_type=jnp.float32)               # (B*H, K)
    y_ref[...] = acc.reshape(B, H, K).astype(jnp.bfloat16)
    _accumulate_stats(stats_ref, acc)


def _bn_relu_to_nchw_kernel(y_ref, sc_ref, sh_ref, out_ref, *, B, Cout, H, W):
    """out = relu(y * scale + shift), stored directly in NCHW layout."""
    K = Cout * W
    z = y_ref[...].astype(jnp.float32).reshape(B * H, K)
    z = jnp.maximum(z * sc_ref[...] + sh_ref[...], 0.0)
    _store_nchw(out_ref, z, B=B, Cout=Cout, H=H, W=W)


def _fused_nobn_kernel(x_ref, w1_ref, b1_ref, w2_ref, b2_ref, out_ref,
                       slab1_ref, slab2_ref, *, B, Cin, Cout, H, W):
    """apply_batchnorm=False path: conv1+bias+relu -> conv2+bias+relu, fused."""
    K2 = Cout * W
    _fill_slab_from_nchw(slab1_ref, x_ref, B=B, Cin=Cin, H=H, W=W)
    acc1 = jnp.dot(slab1_ref[...].astype(jnp.bfloat16), w1_ref[...],
                   preferred_element_type=jnp.float32)
    a1 = jnp.maximum(acc1 + b1_ref[...], 0.0)                       # (B*H, K2)
    _fill_slab_from_flat(slab2_ref, a1, B=B, H=H, K=K2)
    acc2 = jnp.dot(slab2_ref[...].astype(jnp.bfloat16), w2_ref[...],
                   preferred_element_type=jnp.float32)
    z = jnp.maximum(acc2 + b2_ref[...], 0.0)
    _store_nchw(out_ref, z, B=B, Cout=Cout, H=H, W=W)


# ----------------------------------------------------------------------------
# pallas_call wrappers
# ----------------------------------------------------------------------------
def _conv1_bn(x, bw1, *, B, Cin, Cout, H, W):
    N = x.shape[0]
    K2 = Cout * W
    kernel = functools.partial(_conv1_bn_kernel, B=B, Cin=Cin, Cout=Cout, H=H, W=W)
    return pl.pallas_call(
        kernel,
        grid=(N // B,),
        in_specs=[
            pl.BlockSpec((B, Cin, H, W), lambda n: (n, 0, 0, 0)),
            pl.BlockSpec((3 * Cin * W, K2), lambda n: (0, 0)),
        ],
        out_specs=(
            pl.BlockSpec((B, H, K2), lambda n: (n, 0, 0)),
            pl.BlockSpec((2, K2), lambda n: (0, 0)),      # resident accumulator
        ),
        out_shape=(
            jax.ShapeDtypeStruct((N, H, K2), jnp.bfloat16),
            jax.ShapeDtypeStruct((2, K2), jnp.float32),
        ),
        scratch_shapes=[pltpu.VMEM((B * H, 3 * Cin * W), jnp.float32)],
        compiler_params=pltpu.CompilerParams(dimension_semantics=("arbitrary",)),
    )(x, bw1)


def _conv2_bn(y1, sc1, sh1, bw2, *, B, Cout, H, W):
    N = y1.shape[0]
    K2 = Cout * W
    kernel = functools.partial(_conv2_bn_kernel, B=B, Cout=Cout, H=H, W=W)
    return pl.pallas_call(
        kernel,
        grid=(N // B,),
        in_specs=[
            pl.BlockSpec((B, H, K2), lambda n: (n, 0, 0)),
            pl.BlockSpec((1, K2), lambda n: (0, 0)),
            pl.BlockSpec((1, K2), lambda n: (0, 0)),
            pl.BlockSpec((3 * K2, K2), lambda n: (0, 0)),
        ],
        out_specs=(
            pl.BlockSpec((B, H, K2), lambda n: (n, 0, 0)),
            pl.BlockSpec((2, K2), lambda n: (0, 0)),
        ),
        out_shape=(
            jax.ShapeDtypeStruct((N, H, K2), jnp.bfloat16),
            jax.ShapeDtypeStruct((2, K2), jnp.float32),
        ),
        scratch_shapes=[pltpu.VMEM((B * H, 3 * K2), jnp.float32)],
        compiler_params=pltpu.CompilerParams(dimension_semantics=("arbitrary",)),
    )(y1, sc1, sh1, bw2)


def _bn_relu_to_nchw(y2, sc2, sh2, *, B, Cout, H, W):
    N = y2.shape[0]
    K2 = Cout * W
    kernel = functools.partial(_bn_relu_to_nchw_kernel, B=B, Cout=Cout, H=H, W=W)
    return pl.pallas_call(
        kernel,
        grid=(N // B,),
        in_specs=[
            pl.BlockSpec((B, H, K2), lambda n: (n, 0, 0)),
            pl.BlockSpec((1, K2), lambda n: (0, 0)),
            pl.BlockSpec((1, K2), lambda n: (0, 0)),
        ],
        out_specs=pl.BlockSpec((B, Cout, H, W), lambda n: (n, 0, 0, 0)),
        out_shape=jax.ShapeDtypeStruct((N, Cout, H, W), jnp.float32),
        compiler_params=pltpu.CompilerParams(dimension_semantics=("parallel",)),
    )(y2, sc2, sh2)


def _fused_forward_nobn(x, bw1, b1v, bw2, b2v, *, B, Cin, Cout, H, W):
    N = x.shape[0]
    K2 = Cout * W
    kernel = functools.partial(_fused_nobn_kernel, B=B, Cin=Cin, Cout=Cout, H=H, W=W)
    return pl.pallas_call(
        kernel,
        grid=(N // B,),
        in_specs=[
            pl.BlockSpec((B, Cin, H, W), lambda n: (n, 0, 0, 0)),
            pl.BlockSpec((3 * Cin * W, K2), lambda n: (0, 0)),
            pl.BlockSpec((1, K2), lambda n: (0, 0)),
            pl.BlockSpec((3 * K2, K2), lambda n: (0, 0)),
            pl.BlockSpec((1, K2), lambda n: (0, 0)),
        ],
        out_specs=pl.BlockSpec((B, Cout, H, W), lambda n: (n, 0, 0, 0)),
        out_shape=jax.ShapeDtypeStruct((N, Cout, H, W), jnp.float32),
        scratch_shapes=[
            pltpu.VMEM((B * H, 3 * Cin * W), jnp.float32),
            pltpu.VMEM((B * H, 3 * K2), jnp.float32),
        ],
        compiler_params=pltpu.CompilerParams(dimension_semantics=("parallel",)),
    )(x, bw1, b1v, bw2, b2v)


# ----------------------------------------------------------------------------
# Host-side helpers (tiny, run once per forward under jit)
# ----------------------------------------------------------------------------
def _banded_weight(w_hwio, W):
    """(3,3,Cin,Cout) conv weights -> (3*Cin*W, Cout*W) kh-folded banded matrix.

    BW[kh*Cin*W + c*W + wp, d*W + w] = w[kh, kw, c, d] with wp = w + kw - 1;
    rows with wp outside [0, W) dropped (they are the zero W-padding).
    """
    KH, KW, Cin, Cout = w_hwio.shape
    kw_idx = jnp.arange(KW)[:, None, None]
    wp_idx = jnp.arange(W)[None, :, None]
    w_idx = jnp.arange(W)[None, None, :]
    sel = (wp_idx == w_idx + kw_idx - (KW // 2)).astype(w_hwio.dtype)  # (KW,W,W)
    big = jnp.einsum("kxcd,xpw->kcpdw", w_hwio, sel)  # (KH,Cin,W,Cout,W)
    return big.reshape(KH * Cin * W, Cout * W)


def _repeat_channels(vec, W):
    """(C,) per-channel vector -> (1, C*W) matching the lane-flat (c, w) layout."""
    return jnp.repeat(vec.astype(jnp.float32), W).reshape(1, -1)


def _bn_scale_shift(stats, gamma, beta, count, W, eps):
    """Fold the accumulated (2, Cout*W) stats into BN scale/shift lane vectors."""
    Cout = gamma.shape[0]
    mean = stats[0].reshape(Cout, W).sum(axis=1) / count
    ex2 = stats[1].reshape(Cout, W).sum(axis=1) / count
    # TODO(synk): single-sweep E[x^2]-E[x]^2 in f32 can cancel for very
    # large-magnitude activations; use two-pass variance if that matters.
    var = jnp.maximum(ex2 - mean * mean, 0.0)
    scale = gamma * jax.lax.rsqrt(var + eps)
    shift = beta - mean * scale
    return _repeat_channels(scale, W), _repeat_channels(shift, W)


def _pick_batch_block(N, cap=8):
    """Largest divisor of N that is <= cap (bounds slab VMEM, keeps M fat)."""
    b = min(N, cap)
    while N % b:
        b -= 1
    return b


# ----------------------------------------------------------------------------
# Module forward (NCHW in / NCHW out, matching the PyTorch Conv module)
# ----------------------------------------------------------------------------
def conv_module_forward(x_nchw, params, apply_batchnorm=True, eps=1e-5):
    N, Cin, H, W = x_nchw.shape
    Cout = params["w1"].shape[-1]
    B = _pick_batch_block(N)
    x = x_nchw.astype(jnp.float32)

    bw1 = _banded_weight(params["w1"].astype(jnp.float32), W).astype(jnp.bfloat16)
    bw2 = _banded_weight(params["w2"].astype(jnp.float32), W).astype(jnp.bfloat16)

    if not apply_batchnorm:
        # Single fused kernel: conv1 + bias + relu + conv2 + bias + relu.
        b1v = _repeat_channels(params["b1"], W)
        b2v = _repeat_channels(params["b2"], W)
        return _fused_forward_nobn(x, bw1, b1v, bw2, b2v,
                                   B=B, Cin=Cin, Cout=Cout, H=H, W=W)

    count = float(N * H * W)
    # Conv biases are skipped: they cancel exactly in BN's mean subtraction.
    y1, st1 = _conv1_bn(x, bw1, B=B, Cin=Cin, Cout=Cout, H=H, W=W)
    sc1, sh1 = _bn_scale_shift(st1, params["gamma"], params["beta"], count, W, eps)

    y2, st2 = _conv2_bn(y1, sc1, sh1, bw2, B=B, Cout=Cout, H=H, W=W)
    sc2, sh2 = _bn_scale_shift(st2, params["gamma"], params["beta"], count, W, eps)

    return _bn_relu_to_nchw(y2, sc2, sh2, B=B, Cout=Cout, H=H, W=W)
    # TODO(synk): BatchNorm running_mean/running_var tracking is stateful and
    # does not affect this forward output; it is not reproduced here.


# ----------------------------------------------------------------------------
# Params + pure-JAX reference for a correctness check
# ----------------------------------------------------------------------------
def init_params(key, in_ch, out_ch):
    k1, k2, k3, k4, k5, k6 = jax.random.split(key, 6)
    fan1, fan2 = in_ch * 9, out_ch * 9
    w1 = jax.random.uniform(k1, (3, 3, in_ch, out_ch), jnp.float32,
                            -1.0 / fan1 ** 0.5, 1.0 / fan1 ** 0.5)
    b1 = jax.random.uniform(k2, (out_ch,), jnp.float32,
                            -1.0 / fan1 ** 0.5, 1.0 / fan1 ** 0.5)
    w2 = jax.random.uniform(k3, (3, 3, out_ch, out_ch), jnp.float32,
                            -1.0 / fan2 ** 0.5, 1.0 / fan2 ** 0.5)
    b2 = jax.random.uniform(k4, (out_ch,), jnp.float32,
                            -1.0 / fan2 ** 0.5, 1.0 / fan2 ** 0.5)
    gamma = 1.0 + 0.1 * jax.random.normal(k5, (out_ch,), jnp.float32)
    beta = 0.1 * jax.random.normal(k6, (out_ch,), jnp.float32)
    return dict(w1=w1, b1=b1, w2=w2, b2=b2, gamma=gamma, beta=beta)


def _ref_forward(x_nchw, params, apply_batchnorm=True, eps=1e-5):
    def conv(x, w, b):
        y = jax.lax.conv_general_dilated(
            x, w, window_strides=(1, 1), padding="SAME",
            dimension_numbers=("NCHW", "HWIO", "NCHW"))
        return y + b[None, :, None, None]

    def bn(x, gamma, beta):
        mean = x.mean(axis=(0, 2, 3), keepdims=True)
        var = ((x - mean) ** 2).mean(axis=(0, 2, 3), keepdims=True)
        xn = (x - mean) * jax.lax.rsqrt(var + eps)
        return xn * gamma[None, :, None, None] + beta[None, :, None, None]

    y = conv(x_nchw, params["w1"], params["b1"])
    if apply_batchnorm:
        y = bn(y, params["gamma"], params["beta"])
    y = jnp.maximum(y, 0.0)
    y = conv(y, params["w2"], params["b2"])
    if apply_batchnorm:
        y = bn(y, params["gamma"], params["beta"])
    return jnp.maximum(y, 0.0)


# ----------------------------------------------------------------------------
if __name__ == "__main__":
    key = jax.random.PRNGKey(0)
    k_x, k_p = jax.random.split(key)

    batch, in_ch, out_ch, spatial = 2, 4, 8, 16
    x = jax.random.normal(k_x, (batch, in_ch, spatial, spatial), jnp.float32)
    params = init_params(k_p, in_ch, out_ch)

    for apply_bn in (True, False):
        fwd = jax.jit(functools.partial(conv_module_forward,
                                        apply_batchnorm=apply_bn))
        out = fwd(x, params)
        jax.block_until_ready(out)
        assert out.shape == (batch, out_ch, spatial, spatial), out.shape
        assert bool(jnp.all(out >= 0.0))  # ReLU output
        ref = _ref_forward(x, params, apply_batchnorm=apply_bn)
        # bf16 MXU operands / bf16 intermediates -> loose tolerance vs f32 ref.
        assert bool(jnp.allclose(out, ref, atol=5e-2, rtol=5e-2)), (
            float(jnp.max(jnp.abs(out - ref))))

    print("KERNEL_OK")
</pallas_src>

<mosaic_0001>
module attributes {stable_mosaic.version = 11 : i64} {
  func.func @_conv1_bn_kernel(%arg0: i32, %arg1: memref<2x4x16x16xf32, #tpu.memory_space<vmem>>, %arg2: memref<192x128xbf16, #tpu.memory_space<vmem>>, %arg3: memref<2x16x128xbf16, #tpu.memory_space<vmem>>, %arg4: memref<2x128xf32, #tpu.memory_space<vmem>>, %arg5: memref<32x192xf32, #tpu.memory_space<vmem>>) attributes {dimension_semantics = [#tpu.dimension_semantics<arbitrary>], iteration_bounds = array<i64: 1>, scalar_prefetch = 0 : i64, scratch_operands = 1 : i64, tpu.core_type = #tpu.core_type<tc>, window_params = [{transform_indices = @transform_0, window_bounds = array<i64: 2, 4, 16, 16>}, {pipeline_mode = #tpu.pipeline_mode<synchronous>, transform_indices = @transform_1, window_bounds = array<i64: 192, 128>}, {transform_indices = @transform_2, window_bounds = array<i64: 2, 16, 128>}, {pipeline_mode = #tpu.pipeline_mode<synchronous>, transform_indices = @transform_3, window_bounds = array<i64: 2, 128>}]} {
    %cst = arith.constant 0.000000e+00 : f32
    %0 = vector.broadcast %cst : f32 to vector<1x64xf32>
    %c0 = arith.constant 0 : index
    %c0_0 = arith.constant 0 : index
    %1 = vector.load %arg5[%c0, %c0_0] : memref<32x192xf32, #tpu.memory_space<vmem>>, vector<1x64xf32>
    tpu.vector_store %arg5[%c0, %c0_0], %0 {strides = array<i32>} : memref<32x192xf32, #tpu.memory_space<vmem>>, vector<1x64xf32>,
    %c15 = arith.constant 15 : index
    %c128 = arith.constant 128 : index
    %2 = vector.load %arg5[%c15, %c128] : memref<32x192xf32, #tpu.memory_space<vmem>>, vector<1x64xf32>
    tpu.vector_store %arg5[%c15, %c128], %0 {strides = array<i32>} : memref<32x192xf32, #tpu.memory_space<vmem>>, vector<1x64xf32>,
    %c0_1 = arith.constant 0 : index
    %c0_2 = arith.constant 0 : index
    %c0_3 = arith.constant 0 : index
    %c0_4 = arith.constant 0 : index
    %3 = vector.load %arg1[%c0_1, %c0_2, %c0_3, %c0_4] : memref<2x4x16x16xf32, #tpu.memory_space<vmem>>, vector<1x1x16x16xf32>
    %4 = vector.shape_cast %3 : vector<1x1x16x16xf32> to vector<16x16xf32>
    %5 = vector.extract_strided_slice %4 {offsets = [0, 0], sizes = [15, 16], strides = [1, 1]} : vector<16x16xf32> to vector<15x16xf32>
    %c1 = arith.constant 1 : index
    %c0_5 = arith.constant 0 : index
    %6 = vector.load %arg5[%c1, %c0_5] : memref<32x192xf32, #tpu.memory_space<vmem>>, vector<15x16xf32>
    tpu.vector_store %arg5[%c1, %c0_5], %5 {strides = array<i32>} : memref<32x192xf32, #tpu.memory_space<vmem>>, vector<15x16xf32>,
    %c0_6 = arith.constant 0 : index
    %c64 = arith.constant 64 : index
    %7 = vector.load %arg5[%c0_6, %c64] : memref<32x192xf32, #tpu.memory_space<vmem>>, vector<16x16xf32>
    tpu.vector_store %arg5[%c0_6, %c64], %4 {strides = array<i32>} : memref<32x192xf32, #tpu.memory_space<vmem>>, vector<16x16xf32>,
    %8 = vector.extract_strided_slice %4 {offsets = [1, 0], sizes = [15, 16], strides = [1, 1]} : vector<16x16xf32> to vector<15x16xf32>
    %c0_7 = arith.constant 0 : index
    %c128_8 = arith.constant 128 : index
    %9 = vector.load %arg5[%c0_7, %c128_8] : memref<32x192xf32, #tpu.memory_space<vmem>>, vector<15x16xf32>
    tpu.vector_store %arg5[%c0_7, %c128_8], %8 {strides = array<i32>} : memref<32x192xf32, #tpu.memory_space<vmem>>, vector<15x16xf32>,
    %c0_9 = arith.constant 0 : index
    %c1_10 = arith.constant 1 : index
    %c0_11 = arith.constant 0 : index
    %c0_12 = arith.constant 0 : index
    %10 = vector.load %arg1[%c0_9, %c1_10, %c0_11, %c0_12] : memref<2x4x16x16xf32, #tpu.memory_space<vmem>>, vector<1x1x16x16xf32>
    %11 = vector.shape_cast %10 : vector<1x1x16x16xf32> to vector<16x16xf32>
    %12 = vector.extract_strided_slice %11 {offsets = [0, 0], sizes = [15, 16], strides = [1, 1]} : vector<16x16xf32> to vector<15x16xf32>
    %c1_13 = arith.constant 1 : index
    %c16 = arith.constant 16 : index
    %13 = vector.load %arg5[%c1_13, %c16] : memref<32x192xf32, #tpu.memory_space<vmem>>, vector<15x16xf32>
    tpu.vector_store %arg5[%c1_13, %c16], %12 {strides = array<i32>} : memref<32x192xf32, #tpu.memory_space<vmem>>, vector<15x16xf32>,
    %c0_14 = arith.constant 0 : index
    %c80 = arith.constant 80 : index
    %14 = vector.load %arg5[%c0_14, %c80] : memref<32x192xf32, #tpu.memory_space<vmem>>, vector<16x16xf32>
    tpu.vector_store %arg5[%c0_14, %c80], %11 {strides = array<i32>} : memref<32x192xf32, #tpu.memory_space<vmem>>, vector<16x16xf32>,
    %15 = vector.extract_strided_slice %11 {offsets = [1, 0], sizes = [15, 16], strides = [1, 1]} : vector<16x16xf32> to vector<15x16xf32>
    %c0_15 = arith.constant 0 : index
    %c144 = arith.constant 144 : index
    %16 = vector.load %arg5[%c0_15, %c144] : memref<32x192xf32, #tpu.memory_space<vmem>>, vector<15x16xf32>
    tpu.vector_store %arg5[%c0_15, %c144], %15 {strides = array<i32>} : memref<32x192xf32, #tpu.memory_space<vmem>>, vector<15x16xf32>,
    %c0_16 = arith.constant 0 : index
    %c2 = arith.constant 2 : index
    %c0_17 = arith.constant 0 : index
    %c0_18 = arith.constant 0 : index
    %17 = vector.load %arg1[%c0_16, %c2, %c0_17, %c0_18] : memref<2x4x16x16xf32, #tpu.memory_space<vmem>>, vector<1x1x16x16xf32>
    %18 = vector.shape_cast %17 : vector<1x1x16x16xf32> to vector<16x16xf32>
    %19 = vector.extract_strided_slice %18 {offsets = [0, 0], sizes = [15, 16], strides = [1, 1]} : vector<16x16xf32> to vector<15x16xf32>
    %c1_19 = arith.constant 1 : index
    %c32 = arith.constant 32 : index
    %20 = vector.load %arg5[%c1_19, %c32] : memref<32x192xf32, #tpu.memory_space<vmem>>, vector<15x16xf32>
    tpu.vector_store %arg5[%c1_19, %c32], %19 {strides = array<i32>} : memref<32x192xf32, #tpu.memory_space<vmem>>, vector<15x16xf32>,
    %c0_20 = arith.constant 0 : index
    %c96 = arith.constant 96 : index
    %21 = vector.load %arg5[%c0_20, %c96] : memref<32x192xf32, #tpu.memory_space<vmem>>, vector<16x16xf32>
    tpu.vector_store %arg5[%c0_20, %c96], %18 {strides = array<i32>} : memref<32x192xf32, #tpu.memory_space<vmem>>, vector<16x16xf32>,
    %22 = vector.extract_strided_slice %18 {offsets = [1, 0], sizes = [15, 16], strides = [1, 1]} : vector<16x16xf32> to vector<15x16xf32>
    %c0_21 = arith.constant 0 : index
    %c160 = arith.constant 160 : index
    %23 = vector.load %arg5[%c0_21, %c160] : memref<32x192xf32, #tpu.memory_space<vmem>>, vector<15x16xf32>
    tpu.vector_store %arg5[%c0_21, %c160], %22 {strides = array<i32>} : memref<32x192xf32, #tpu.memory_space<vmem>>, vector<15x16xf32>,
    %c0_22 = arith.constant 0 : index
    %c3 = arith.constant 3 : index
    %c0_23 = arith.constant 0 : index
    %c0_24 = arith.constant 0 : index
    %24 = vector.load %arg1[%c0_22, %c3, %c0_23, %c0_24] : memref<2x4x16x16xf32, #tpu.memory_space<vmem>>, vector<1x1x16x16xf32>
    %25 = vector.shape_cast %24 : vector<1x1x16x16xf32> to vector<16x16xf32>
    %26 = vector.extract_strided_slice %25 {offsets = [0, 0], sizes = [15, 16], strides = [1, 1]} : vector<16x16xf32> to vector<15x16xf32>
    %c1_25 = arith.constant 1 : index
    %c48 = arith.constant 48 : index
    %27 = vector.load %arg5[%c1_25, %c48] : memref<32x192xf32, #tpu.memory_space<vmem>>, vector<15x16xf32>
    tpu.vector_store %arg5[%c1_25, %c48], %26 {strides = array<i32>} : memref<32x192xf32, #tpu.memory_space<vmem>>, vector<15x16xf32>,
    %c0_26 = arith.constant 0 : index
    %c112 = arith.constant 112 : index
    %28 = vector.load %arg5[%c0_26, %c112] : memref<32x192xf32, #tpu.memory_space<vmem>>, vector<16x16xf32>
    tpu.vector_store %arg5[%c0_26, %c112], %25 {strides = array<i32>} : memref<32x192xf32, #tpu.memory_space<vmem>>, vector<16x16xf32>,
    %29 = vector.extract_strided_slice %25 {offsets = [1, 0], sizes = [15, 16], strides = [1, 1]} : vector<16x16xf32> to vector<15x16xf32>
    %c0_27 = arith.constant 0 : index
    %c176 = arith.constant 176 : index
    %30 = vector.load %arg5[%c0_27, %c176] : memref<32x192xf32, #tpu.memory_space<vmem>>, vector<15x16xf32>
    tpu.vector_store %arg5[%c0_27, %c176], %29 {strides = array<i32>} : memref<32x192xf32, #tpu.memory_space<vmem>>, vector<15x16xf32>,
    %c16_28 = arith.constant 16 : index
    %c0_29 = arith.constant 0 : index
    %31 = vector.load %arg5[%c16_28, %c0_29] : memref<32x192xf32, #tpu.memory_space<vmem>>, vector<1x64xf32>
    tpu.vector_store %arg5[%c16_28, %c0_29], %0 {strides = array<i32>} : memref<32x192xf32, #tpu.memory_space<vmem>>, vector<1x64xf32>,
    %c31 = arith.constant 31 : index
    %c128_30 = arith.constant 128 : index
    %32 = vector.load %arg5[%c31, %c128_30] : memref<32x192xf32, #tpu.memory_space<vmem>>, vector<1x64xf32>
    tpu.vector_store %arg5[%c31, %c128_30], %0 {strides = array<i32>} : memref<32x192xf32, #tpu.memory_space<vmem>>, vector<1x64xf32>,
    %c1_31 = arith.constant 1 : index
    %c0_32 = arith.constant 0 : index
    %c0_33 = arith.constant 0 : index
    %c0_34 = arith.constant 0 : index
    %33 = vector.load %arg1[%c1_31, %c0_32, %c0_33, %c0_34] : memref<2x4x16x16xf32, #tpu.memory_space<vmem>>, vector<1x1x16x16xf32>
    %34 = vector.shape_cast %33 : vector<1x1x16x16xf32> to vector<16x16xf32>
    %35 = vector.extract_strided_slice %34 {offsets = [0, 0], sizes = [15, 16], strides = [1, 1]} : vector<16x16xf32> to vector<15x16xf32>
    %c17 = arith.constant 17 : index
    %c0_35 = arith.constant 0 : index
    %36 = vector.load %arg5[%c17, %c0_35] : memref<32x192xf32, #tpu.memory_space<vmem>>, vector<15x16xf32>
    tpu.vector_store %arg5[%c17, %c0_35], %35 {strides = array<i32>} : memref<32x192xf32, #tpu.memory_space<vmem>>, vector<15x16xf32>,
    %c16_36 = arith.constant 16 : index
    %c64_37 = arith.constant 64 : index
    %37 = vector.load %arg5[%c16_36, %c64_37] : memref<32x192xf32, #tpu.memory_space<vmem>>, vector<16x16xf32>
    tpu.vector_store %arg5[%c16_36, %c64_37], %34 {strides = array<i32>} : memref<32x192xf32, #tpu.memory_space<vmem>>, vector<16x16xf32>,
    %38 = vector.extract_strided_slice %34 {offsets = [1, 0], sizes = [15, 16], strides = [1, 1]} : vector<16x16xf32> to vector<15x16xf32>
    %c16_38 = arith.constant 16 : index
    %c128_39 = arith.constant 128 : index
    %39 = vector.load %arg5[%c16_38, %c128_39] : memref<32x192xf32, #tpu.memory_space<vmem>>, vector<15x16xf32>
    tpu.vector_store %arg5[%c16_38, %c128_39], %38 {strides = array<i32>} : memref<32x192xf32, #tpu.memory_space<vmem>>, vector<15x16xf32>,
    %c1_40 = arith.constant 1 : index
    %c1_41 = arith.constant 1 : index
    %c0_42 = arith.constant 0 : index
    %c0_43 = arith.constant 0 : index
    %40 = vector.load %arg1[%c1_40, %c1_41, %c0_42, %c0_43] : memref<2x4x16x16xf32, #tpu.memory_space<vmem>>, vector<1x1x16x16xf32>
    %41 = vector.shape_cast %40 : vector<1x1x16x16xf32> to vector<16x16xf32>
    %42 = vector.extract_strided_slice %41 {offsets = [0, 0], sizes = [15, 16], strides = [1, 1]} : vector<16x16xf32> to vector<15x16xf32>
    %c17_44 = arith.constant 17 : index
    %c16_45 = arith.constant 16 : index
    %43 = vector.load %arg5[%c17_44, %c16_45] : memref<32x192xf32, #tpu.memory_space<vmem>>, vector<15x16xf32>
    tpu.vector_store %arg5[%c17_44, %c16_45], %42 {strides = array<i32>} : memref<32x192xf32, #tpu.memory_space<vmem>>, vector<15x16xf32>,
    %c16_46 = arith.constant 16 : index
    %c80_47 = arith.constant 80 : index
    %44 = vector.load %arg5[%c16_46, %c80_47] : memref<32x192xf32, #tpu.memory_space<vmem>>, vector<16x16xf32>
    tpu.vector_store %arg5[%c16_46, %c80_47], %41 {strides = array<i32>} : memref<32x192xf32, #tpu.memory_space<vmem>>, vector<16x16xf32>,
    %45 = vector.extract_strided_slice %41 {offsets = [1, 0], sizes = [15, 16], strides = [1, 1]} : vector<16x16xf32> to vector<15x16xf32>
    %c16_48 = arith.constant 16 : index
    %c144_49 = arith.constant 144 : index
    %46 = vector.load %arg5[%c16_48, %c144_49] : memref<32x192xf32, #tpu.memory_space<vmem>>, vector<15x16xf32>
    tpu.vector_store %arg5[%c16_48, %c144_49], %45 {strides = array<i32>} : memref<32x192xf32, #tpu.memory_space<vmem>>, vector<15x16xf32>,
    %c1_50 = arith.constant 1 : index
    %c2_51 = arith.constant 2 : index
    %c0_52 = arith.constant 0 : index
    %c0_53 = arith.constant 0 : index
    %47 = vector.load %arg1[%c1_50, %c2_51, %c0_52, %c0_53] : memref<2x4x16x16xf32, #tpu.memory_space<vmem>>, vector<1x1x16x16xf32>
    %48 = vector.shape_cast %47 : vector<1x1x16x16xf32> to vector<16x16xf32>
    %49 = vector.extract_strided_slice %48 {offsets = [0, 0], sizes = [15, 16], strides = [1, 1]} : vector<16x16xf32> to vector<15x16xf32>
    %c17_54 = arith.constant 17 : index
    %c32_55 = arith.constant 32 : index
    %50 = vector.load %arg5[%c17_54, %c32_55] : memref<32x192xf32, #tpu.memory_space<vmem>>, vector<15x16xf32>
    tpu.vector_store %arg5[%c17_54, %c32_55], %49 {strides = array<i32>} : memref<32x192xf32, #tpu.memory_space<vmem>>, vector<15x16xf32>,
    %c16_56 = arith.constant 16 : index
    %c96_57 = arith.constant 96 : index
    %51 = vector.load %arg5[%c16_56, %c96_57] : memref<32x192xf32, #tpu.memory_space<vmem>>, vector<16x16xf32>
    tpu.vector_store %arg5[%c16_56, %c96_57], %48 {strides = array<i32>} : memref<32x192xf32, #tpu.memory_space<vmem>>, vector<16x16xf32>,
    %52 = vector.extract_strided_slice %48 {offsets = [1, 0], sizes = [15, 16], strides = [1, 1]} : vector<16x16xf32> to vector<15x16xf32>
    %c16_58 = arith.constant 16 : index
    %c160_59 = arith.constant 160 : index
    %53 = vector.load %arg5[%c16_58, %c160_59] : memref<32x192xf32, #tpu.memory_space<vmem>>, vector<15x16xf32>
    tpu.vector_store %arg5[%c16_58, %c160_59], %52 {strides = array<i32>} : memref<32x192xf32, #tpu.memory_space<vmem>>, vector<15x16xf32>,
    %c1_60 = arith.constant 1 : index
    %c3_61 = arith.constant 3 : index
    %c0_62 = arith.constant 0 : index
    %c0_63 = arith.constant 0 : index
    %54 = vector.load %arg1[%c1_60, %c3_61, %c0_62, %c0_63] : memref<2x4x16x16xf32, #tpu.memory_space<vmem>>, vector<1x1x16x16xf32>
    %55 = vector.shape_cast %54 : vector<1x1x16x16xf32> to vector<16x16xf32>
    %56 = vector.extract_strided_slice %55 {offsets = [0, 0], sizes = [15, 16], strides = [1, 1]} : vector<16x16xf32> to vector<15x16xf32>
    %c17_64 = arith.constant 17 : index
    %c48_65 = arith.constant 48 : index
    %57 = vector.load %arg5[%c17_64, %c48_65] : memref<32x192xf32, #tpu.memory_space<vmem>>, vector<15x16xf32>
    tpu.vector_store %arg5[%c17_64, %c48_65], %56 {strides = array<i32>} : memref<32x192xf32, #tpu.memory_space<vmem>>, vector<15x16xf32>,
    %c16_66 = arith.constant 16 : index
    %c112_67 = arith.constant 112 : index
    %58 = vector.load %arg5[%c16_66, %c112_67] : memref<32x192xf32, #tpu.memory_space<vmem>>, vector<16x16xf32>
    tpu.vector_store %arg5[%c16_66, %c112_67], %55 {strides = array<i32>} : memref<32x192xf32, #tpu.memory_space<vmem>>, vector<16x16xf32>,
    %59 = vector.extract_strided_slice %55 {offsets = [1, 0], sizes = [15, 16], strides = [1, 1]} : vector<16x16xf32> to vector<15x16xf32>
    %c16_68 = arith.constant 16 : index
    %c176_69 = arith.constant 176 : index
    %60 = vector.load %arg5[%c16_68, %c176_69] : memref<32x192xf32, #tpu.memory_space<vmem>>, vector<15x16xf32>
    tpu.vector_store %arg5[%c16_68, %c176_69], %59 {strides = array<i32>} : memref<32x192xf32, #tpu.memory_space<vmem>>, vector<15x16xf32>,
    %c0_70 = arith.constant 0 : index
    %c0_71 = arith.constant 0 : index
    %61 = vector.load %arg5[%c0_70, %c0_71] : memref<32x192xf32, #tpu.memory_space<vmem>>, vector<32x192xf32>
    %62 = arith.truncf %61 : vector<32x192xf32> to vector<32x192xbf16>
    %c0_72 = arith.constant 0 : index
    %c0_73 = arith.constant 0 : index
    %63 = vector.load %arg2[%c0_72, %c0_73] : memref<192x128xbf16, #tpu.memory_space<vmem>>, vector<192x128xbf16>
    %cst_74 = arith.constant dense<0.000000e+00> : vector<32x128xf32>
    %64 = tpu.matmul %62, %63, %cst_74 {dimension_numbers = #tpu.dot_dimension_numbers<[1], [0], [0], [1], [0, 0, 1, 1], [], []>} : vector<32x192xbf16>, vector<192x128xbf16>, vector<32x128xf32> -> vector<32x128xf32>
    %65 = vector.shape_cast %64 : vector<32x128xf32> to vector<2x16x128xf32>
    %66 = arith.truncf %65 : vector<2x16x128xf32> to vector<2x16x128xbf16>
    %c0_75 = arith.constant 0 : index
    %c0_76 = arith.constant 0 : index
    %c0_77 = arith.constant 0 : index
    %67 = vector.load %arg3[%c0_75, %c0_76, %c0_77] : memref<2x16x128xbf16, #tpu.memory_space<vmem>>, vector<2x16x128xbf16>
    tpu.vector_store %arg3[%c0_75, %c0_76, %c0_77], %66 {strides = array<i32>} : memref<2x16x128xbf16, #tpu.memory_space<vmem>>, vector<2x16x128xbf16>,
    %c0_i32 = arith.constant 0 : i32
    %68 = arith.cmpi eq, %arg0, %c0_i32 : i32
    %69 = arith.extui %68 : i1 to i32
    %c0_i32_78 = arith.constant 0 : i32
    %70 = arith.cmpi ne, %69, %c0_i32_78 : i32
    scf.if %70 {
      %cst_89 = arith.constant 0.000000e+00 : f32
      %82 = vector.broadcast %cst_89 : f32 to vector<2x128xf32>
      %c0_90 = arith.constant 0 : index
      %c0_91 = arith.constant 0 : index
      %83 = vector.load %arg4[%c0_90, %c0_91] : memref<2x128xf32, #tpu.memory_space<vmem>>, vector<2x128xf32>
      tpu.vector_store %arg4[%c0_90, %c0_91], %82 {strides = array<i32>} : memref<2x128xf32, #tpu.memory_space<vmem>>, vector<2x128xf32>,
    } else {
    }
    %c0_79 = arith.constant 0 : index
    %c0_80 = arith.constant 0 : index
    %71 = vector.load %arg4[%c0_79, %c0_80] : memref<2x128xf32, #tpu.memory_space<vmem>>, vector<1x128xf32>
    %cst_81 = arith.constant dense<0.000000e+00> : vector<128xf32>
    %72 = vector.multi_reduction <add>, %64, %cst_81 [0] : vector<32x128xf32> to vector<128xf32>
    %73 = vector.shape_cast %72 : vector<128xf32> to vector<1x128xf32>
    %74 = arith.addf %71, %73 : vector<1x128xf32>
    %c0_82 = arith.constant 0 : index
    %c0_83 = arith.constant 0 : index
    %75 = vector.load %arg4[%c0_82, %c0_83] : memref<2x128xf32, #tpu.memory_space<vmem>>, vector<1x128xf32>
    tpu.vector_store %arg4[%c0_82, %c0_83], %74 {strides = array<i32>} : memref<2x128xf32, #tpu.memory_space<vmem>>, vector<1x128xf32>,
    %c1_84 = arith.constant 1 : index
    %c0_85 = arith.constant 0 : index
    %76 = vector.load %arg4[%c1_84, %c0_85] : memref<2x128xf32, #tpu.memory_space<vmem>>, vector<1x128xf32>
    %77 = arith.mulf %64, %64 : vector<32x128xf32>
    %cst_86 = arith.constant dense<0.000000e+00> : vector<128xf32>
    %78 = vector.multi_reduction <add>, %77, %cst_86 [0] : vector<32x128xf32> to vector<128xf32>
    %79 = vector.shape_cast %78 : vector<128xf32> to vector<1x128xf32>
    %80 = arith.addf %76, %79 : vector<1x128xf32>
    %c1_87 = arith.constant 1 : index
    %c0_88 = arith.constant 0 : index
    %81 = vector.load %arg4[%c1_87, %c0_88] : memref<2x128xf32, #tpu.memory_space<vmem>>, vector<1x128xf32>
    tpu.vector_store %arg4[%c1_87, %c0_88], %80 {strides = array<i32>} : memref<2x128xf32, #tpu.memory_space<vmem>>, vector<1x128xf32>,
    return
  }
  func.func @transform_0(%arg0: i32) -> (i32, i32, i32, i32) {
    %c0_i32 = arith.constant 0 : i32
    %c0_i32_0 = arith.constant 0 : i32
    %c0_i32_1 = arith.constant 0 : i32
    %c0_i32_2 = arith.constant 0 : i32
    return %arg0, %c0_i32, %c0_i32_0, %c0_i32_1 : i32, i32, i32, i32
  }
  func.func @transform_1(%arg0: i32) -> (i32, i32) {
    %c0_i32 = arith.constant 0 : i32
    %c0_i32_0 = arith.constant 0 : i32
    %c0_i32_1 = arith.constant 0 : i32
    return %c0_i32, %c0_i32_0 : i32, i32
  }
  func.func @transform_2(%arg0: i32) -> (i32, i32, i32) {
    %c0_i32 = arith.constant 0 : i32
    %c0_i32_0 = arith.constant 0 : i32
    %c0_i32_1 = arith.constant 0 : i32
    return %arg0, %c0_i32, %c0_i32_0 : i32, i32, i32
  }
  func.func @transform_3(%arg0: i32) -> (i32, i32) {
    %c0_i32 = arith.constant 0 : i32
    %c0_i32_0 = arith.constant 0 : i32
    %c0_i32_1 = arith.constant 0 : i32
    return %c0_i32, %c0_i32_0 : i32, i32
  }
}

module attributes {stable_mosaic.version = 11 : i64} {
  func.func @_conv2_bn_kernel(%arg0: i32, %arg1: memref<2x16x128xbf16, #tpu.memory_space<vmem>>, %arg2: memref<1x128xf32, #tpu.memory_space<vmem>>, %arg3: memref<1x128xf32, #tpu.memory_space<vmem>>, %arg4: memref<384x128xbf16, #tpu.memory_space<vmem>>, %arg5: memref<2x16x128xbf16, #tpu.memory_space<vmem>>, %arg6: memref<2x128xf32, #tpu.memory_space<vmem>>, %arg7: memref<32x384xf32, #tpu.memory_space<vmem>>) attributes {dimension_semantics = [#tpu.dimension_semantics<arbitrary>], iteration_bounds = array<i64: 1>, scalar_prefetch = 0 : i64, scratch_operands = 1 : i64, tpu.core_type = #tpu.core_type<tc>, window_params = [{transform_indices = @transform_0, window_bounds = array<i64: 2, 16, 128>}, {pipeline_mode = #tpu.pipeline_mode<synchronous>, transform_indices = @transform_1, window_bounds = array<i64: 1, 128>}, {pipeline_mode = #tpu.pipeline_mode<synchronous>, transform_indices = @transform_2, window_bounds = array<i64: 1, 128>}, {pipeline_mode = #tpu.pipeline_mode<synchronous>, transform_indices = @transform_3, window_bounds = array<i64: 384, 128>}, {transform_indices = @transform_4, window_bounds = array<i64: 2, 16, 128>}, {pipeline_mode = #tpu.pipeline_mode<synchronous>, transform_indices = @transform_5, window_bounds = array<i64: 2, 128>}]} {
    %c0 = arith.constant 0 : index
    %c0_0 = arith.constant 0 : index
    %c0_1 = arith.constant 0 : index
    %0 = vector.load %arg1[%c0, %c0_0, %c0_1] : memref<2x16x128xbf16, #tpu.memory_space<vmem>>, vector<2x16x128xbf16>
    %1 = arith.extf %0 : vector<2x16x128xbf16> to vector<2x16x128xf32>
    %2 = vector.shape_cast %1 : vector<2x16x128xf32> to vector<32x128xf32>
    %c0_2 = arith.constant 0 : index
    %c0_3 = arith.constant 0 : index
    %3 = vector.load %arg2[%c0_2, %c0_3] : memref<1x128xf32, #tpu.memory_space<vmem>>, vector<1x128xf32>
    %4 = vector.broadcast %3 : vector<1x128xf32> to vector<32x128xf32>
    %5 = arith.mulf %2, %4 : vector<32x128xf32>
    %c0_4 = arith.constant 0 : index
    %c0_5 = arith.constant 0 : index
    %6 = vector.load %arg3[%c0_4, %c0_5] : memref<1x128xf32, #tpu.memory_space<vmem>>, vector<1x128xf32>
    %7 = vector.broadcast %6 : vector<1x128xf32> to vector<32x128xf32>
    %8 = arith.addf %5, %7 : vector<32x128xf32>
    %cst = arith.constant 0.000000e+00 : f32
    %9 = vector.broadcast %cst : f32 to vector<32x128xf32>
    %10 = arith.maximumf %8, %9 : vector<32x128xf32>
    %cst_6 = arith.constant 0.000000e+00 : f32
    %11 = vector.broadcast %cst_6 : f32 to vector<1x128xf32>
    %12 = vector.extract_strided_slice %10 {offsets = [0, 0], sizes = [16, 128], strides = [1, 1]} : vector<32x128xf32> to vector<16x128xf32>
    %c0_7 = arith.constant 0 : index
    %c0_8 = arith.constant 0 : index
    %13 = vector.load %arg7[%c0_7, %c0_8] : memref<32x384xf32, #tpu.memory_space<vmem>>, vector<1x128xf32>
    tpu.vector_store %arg7[%c0_7, %c0_8], %11 {strides = array<i32>} : memref<32x384xf32, #tpu.memory_space<vmem>>, vector<1x128xf32>,
    %14 = vector.extract_strided_slice %12 {offsets = [0, 0], sizes = [15, 128], strides = [1, 1]} : vector<16x128xf32> to vector<15x128xf32>
    %c1 = arith.constant 1 : index
    %c0_9 = arith.constant 0 : index
    %15 = vector.load %arg7[%c1, %c0_9] : memref<32x384xf32, #tpu.memory_space<vmem>>, vector<15x128xf32>
    tpu.vector_store %arg7[%c1, %c0_9], %14 {strides = array<i32>} : memref<32x384xf32, #tpu.memory_space<vmem>>, vector<15x128xf32>,
    %c0_10 = arith.constant 0 : index
    %c128 = arith.constant 128 : index
    %16 = vector.load %arg7[%c0_10, %c128] : memref<32x384xf32, #tpu.memory_space<vmem>>, vector<16x128xf32>
    tpu.vector_store %arg7[%c0_10, %c128], %12 {strides = array<i32>} : memref<32x384xf32, #tpu.memory_space<vmem>>, vector<16x128xf32>,
    %17 = vector.extract_strided_slice %12 {offsets = [1, 0], sizes = [15, 128], strides = [1, 1]} : vector<16x128xf32> to vector<15x128xf32>
    %c0_11 = arith.constant 0 : index
    %c256 = arith.constant 256 : index
    %18 = vector.load %arg7[%c0_11, %c256] : memref<32x384xf32, #tpu.memory_space<vmem>>, vector<15x128xf32>
    tpu.vector_store %arg7[%c0_11, %c256], %17 {strides = array<i32>} : memref<32x384xf32, #tpu.memory_space<vmem>>, vector<15x128xf32>,
    %c15 = arith.constant 15 : index
    %c256_12 = arith.constant 256 : index
    %19 = vector.load %arg7[%c15, %c256_12] : memref<32x384xf32, #tpu.memory_space<vmem>>, vector<1x128xf32>
    tpu.vector_store %arg7[%c15, %c256_12], %11 {strides = array<i32>} : memref<32x384xf32, #tpu.memory_space<vmem>>, vector<1x128xf32>,
    %20 = vector.extract_strided_slice %10 {offsets = [16, 0], sizes = [16, 128], strides = [1, 1]} : vector<32x128xf32> to vector<16x128xf32>
    %c16 = arith.constant 16 : index
    %c0_13 = arith.constant 0 : index
    %21 = vector.load %arg7[%c16, %c0_13] : memref<32x384xf32, #tpu.memory_space<vmem>>, vector<1x128xf32>
    tpu.vector_store %arg7[%c16, %c0_13], %11 {strides = array<i32>} : memref<32x384xf32, #tpu.memory_space<vmem>>, vector<1x128xf32>,
    %22 = vector.extract_strided_slice %20 {offsets = [0, 0], sizes = [15, 128], strides = [1, 1]} : vector<16x128xf32> to vector<15x128xf32>
    %c17 = arith.constant 17 : index
    %c0_14 = arith.constant 0 : index
    %23 = vector.load %arg7[%c17, %c0_14] : memref<32x384xf32, #tpu.memory_space<vmem>>, vector<15x128xf32>
    tpu.vector_store %arg7[%c17, %c0_14], %22 {strides = array<i32>} : memref<32x384xf32, #tpu.memory_space<vmem>>, vector<15x128xf32>,
    %c16_15 = arith.constant 16 : index
    %c128_16 = arith.constant 128 : index
    %24 = vector.load %arg7[%c16_15, %c128_16] : memref<32x384xf32, #tpu.memory_space<vmem>>, vector<16x128xf32>
    tpu.vector_store %arg7[%c16_15, %c128_16], %20 {strides = array<i32>} : memref<32x384xf32, #tpu.memory_space<vmem>>, vector<16x128xf32>,
    %25 = vector.extract_strided_slice %20 {offsets = [1, 0], sizes = [15, 128], strides = [1, 1]} : vector<16x128xf32> to vector<15x128xf32>
    %c16_17 = arith.constant 16 : index
    %c256_18 = arith.constant 256 : index
    %26 = vector.load %arg7[%c16_17, %c256_18] : memref<32x384xf32, #tpu.memory_space<vmem>>, vector<15x128xf32>
    tpu.vector_store %arg7[%c16_17, %c256_18], %25 {strides = array<i32>} : memref<32x384xf32, #tpu.memory_space<vmem>>, vector<15x128xf32>,
    %c31 = arith.constant 31 : index
    %c256_19 = arith.constant 256 : index
    %27 = vector.load %arg7[%c31, %c256_19] : memref<32x384xf32, #tpu.memory_space<vmem>>, vector<1x128xf32>
    tpu.vector_store %arg7[%c31, %c256_19], %11 {strides = array<i32>} : memref<32x384xf32, #tpu.memory_space<vmem>>, vector<1x128xf32>,
    %c0_20 = arith.constant 0 : index
    %c0_21 = arith.constant 0 : index
    %28 = vector.load %arg7[%c0_20, %c0_21] : memref<32x384xf32, #tpu.memory_space<vmem>>, vector<32x384xf32>
    %29 = arith.truncf %28 : vector<32x384xf32> to vector<32x384xbf16>
    %c0_22 = arith.constant 0 : index
    %c0_23 = arith.constant 0 : index
    %30 = vector.load %arg4[%c0_22, %c0_23] : memref<384x128xbf16, #tpu.memory_space<vmem>>, vector<384x128xbf16>
    %cst_24 = arith.constant dense<0.000000e+00> : vector<32x128xf32>
    %31 = tpu.matmul %29, %30, %cst_24 {dimension_numbers = #tpu.dot_dimension_numbers<[1], [0], [0], [1], [0, 0, 1, 1], [], []>} : vector<32x384xbf16>, vector<384x128xbf16>, vector<32x128xf32> -> vector<32x128xf32>
    %32 = vector.shape_cast %31 : vector<32x128xf32> to vector<2x16x128xf32>
    %33 = arith.truncf %32 : vector<2x16x128xf32> to vector<2x16x128xbf16>
    %c0_25 = arith.constant 0 : index
    %c0_26 = arith.constant 0 : index
    %c0_27 = arith.constant 0 : index
    %34 = vector.load %arg5[%c0_25, %c0_26, %c0_27] : memref<2x16x128xbf16, #tpu.memory_space<vmem>>, vector<2x16x128xbf16>
    tpu.vector_store %arg5[%c0_25, %c0_26, %c0_27], %33 {strides = array<i32>} : memref<2x16x128xbf16, #tpu.memory_space<vmem>>, vector<2x16x128xbf16>,
    %c0_i32 = arith.constant 0 : i32
    %35 = arith.cmpi eq, %arg0, %c0_i32 : i32
    %36 = arith.extui %35 : i1 to i32
    %c0_i32_28 = arith.constant 0 : i32
    %37 = arith.cmpi ne, %36, %c0_i32_28 : i32
    scf.if %37 {
      %cst_39 = arith.constant 0.000000e+00 : f32
      %49 = vector.broadcast %cst_39 : f32 to vector<2x128xf32>
      %c0_40 = arith.constant 0 : index
      %c0_41 = arith.constant 0 : index
      %50 = vector.load %arg6[%c0_40, %c0_41] : memref<2x128xf32, #tpu.memory_space<vmem>>, vector<2x128xf32>
      tpu.vector_store %arg6[%c0_40, %c0_41], %49 {strides = array<i32>} : memref<2x128xf32, #tpu.memory_space<vmem>>, vector<2x128xf32>,
    } else {
    }
    %c0_29 = arith.constant 0 : index
    %c0_30 = arith.constant 0 : index
    %38 = vector.load %arg6[%c0_29, %c0_30] : memref<2x128xf32, #tpu.memory_space<vmem>>, vector<1x128xf32>
    %cst_31 = arith.constant dense<0.000000e+00> : vector<128xf32>
    %39 = vector.multi_reduction <add>, %31, %cst_31 [0] : vector<32x128xf32> to vector<128xf32>
    %40 = vector.shape_cast %39 : vector<128xf32> to vector<1x128xf32>
    %41 = arith.addf %38, %40 : vector<1x128xf32>
    %c0_32 = arith.constant 0 : index
    %c0_33 = arith.constant 0 : index
    %42 = vector.load %arg6[%c0_32, %c0_33] : memref<2x128xf32, #tpu.memory_space<vmem>>, vector<1x128xf32>
    tpu.vector_store %arg6[%c0_32, %c0_33], %41 {strides = array<i32>} : memref<2x128xf32, #tpu.memory_space<vmem>>, vector<1x128xf32>,
    %c1_34 = arith.constant 1 : index
    %c0_35 = arith.constant 0 : index
    %43 = vector.load %arg6[%c1_34, %c0_35] : memref<2x128xf32, #tpu.memory_space<vmem>>, vector<1x128xf32>
    %44 = arith.mulf %31, %31 : vector<32x128xf32>
    %cst_36 = arith.constant dense<0.000000e+00> : vector<128xf32>
    %45 = vector.multi_reduction <add>, %44, %cst_36 [0] : vector<32x128xf32> to vector<128xf32>
    %46 = vector.shape_cast %45 : vector<128xf32> to vector<1x128xf32>
    %47 = arith.addf %43, %46 : vector<1x128xf32>
    %c1_37 = arith.constant 1 : index
    %c0_38 = arith.constant 0 : index
    %48 = vector.load %arg6[%c1_37, %c0_38] : memref<2x128xf32, #tpu.memory_space<vmem>>, vector<1x128xf32>
    tpu.vector_store %arg6[%c1_37, %c0_38], %47 {strides = array<i32>} : memref<2x128xf32, #tpu.memory_space<vmem>>, vector<1x128xf32>,
    return
  }
  func.func @transform_0(%arg0: i32) -> (i32, i32, i32) {
    %c0_i32 = arith.constant 0 : i32
    %c0_i32_0 = arith.constant 0 : i32
    %c0_i32_1 = arith.constant 0 : i32
    return %arg0, %c0_i32, %c0_i32_0 : i32, i32, i32
  }
  func.func @transform_1(%arg0: i32) -> (i32, i32) {
    %c0_i32 = arith.constant 0 : i32
    %c0_i32_0 = arith.constant 0 : i32
    %c0_i32_1 = arith.constant 0 : i32
    return %c0_i32, %c0_i32_0 : i32, i32
  }
  func.func @transform_2(%arg0: i32) -> (i32, i32) {
    %c0_i32 = arith.constant 0 : i32
    %c0_i32_0 = arith.constant 0 : i32
    %c0_i32_1 = arith.constant 0 : i32
    return %c0_i32, %c0_i32_0 : i32, i32
  }
  func.func @transform_3(%arg0: i32) -> (i32, i32) {
    %c0_i32 = arith.constant 0 : i32
    %c0_i32_0 = arith.constant 0 : i32
    %c0_i32_1 = arith.constant 0 : i32
    return %c0_i32, %c0_i32_0 : i32, i32
  }
  func.func @transform_4(%arg0: i32) -> (i32, i32, i32) {
    %c0_i32 = arith.constant 0 : i32
    %c0_i32_0 = arith.constant 0 : i32
    %c0_i32_1 = arith.constant 0 : i32
    return %arg0, %c0_i32, %c0_i32_0 : i32, i32, i32
  }
  func.func @transform_5(%arg0: i32) -> (i32, i32) {
    %c0_i32 = arith.constant 0 : i32
    %c0_i32_0 = arith.constant 0 : i32
    %c0_i32_1 = arith.constant 0 : i32
    return %c0_i32, %c0_i32_0 : i32, i32
  }
}

module attributes {stable_mosaic.version = 11 : i64} {
  func.func @_bn_relu_to_nchw_kernel(%arg0: i32, %arg1: memref<2x16x128xbf16, #tpu.memory_space<vmem>>, %arg2: memref<1x128xf32, #tpu.memory_space<vmem>>, %arg3: memref<1x128xf32, #tpu.memory_space<vmem>>, %arg4: memref<2x8x16x16xf32, #tpu.memory_space<vmem>>) attributes {dimension_semantics = [#tpu.dimension_semantics<parallel>], iteration_bounds = array<i64: 1>, scalar_prefetch = 0 : i64, scratch_operands = 0 : i64, tpu.core_type = #tpu.core_type<tc>, window_params = [{transform_indices = @transform_0, window_bounds = array<i64: 2, 16, 128>}, {pipeline_mode = #tpu.pipeline_mode<synchronous>, transform_indices = @transform_1, window_bounds = array<i64: 1, 128>}, {pipeline_mode = #tpu.pipeline_mode<synchronous>, transform_indices = @transform_2, window_bounds = array<i64: 1, 128>}, {transform_indices = @transform_3, window_bounds = array<i64: 2, 8, 16, 16>}]} {
    %c0 = arith.constant 0 : index
    %c0_0 = arith.constant 0 : index
    %c0_1 = arith.constant 0 : index
    %0 = vector.load %arg1[%c0, %c0_0, %c0_1] : memref<2x16x128xbf16, #tpu.memory_space<vmem>>, vector<2x16x128xbf16>
    %1 = arith.extf %0 : vector<2x16x128xbf16> to vector<2x16x128xf32>
    %2 = vector.shape_cast %1 : vector<2x16x128xf32> to vector<32x128xf32>
    %c0_2 = arith.constant 0 : index
    %c0_3 = arith.constant 0 : index
    %3 = vector.load %arg2[%c0_2, %c0_3] : memref<1x128xf32, #tpu.memory_space<vmem>>, vector<1x128xf32>
    %4 = vector.broadcast %3 : vector<1x128xf32> to vector<32x128xf32>
    %5 = arith.mulf %2, %4 : vector<32x128xf32>
    %c0_4 = arith.constant 0 : index
    %c0_5 = arith.constant 0 : index
    %6 = vector.load %arg3[%c0_4, %c0_5] : memref<1x128xf32, #tpu.memory_space<vmem>>, vector<1x128xf32>
    %7 = vector.broadcast %6 : vector<1x128xf32> to vector<32x128xf32>
    %8 = arith.addf %5, %7 : vector<32x128xf32>
    %cst = arith.constant 0.000000e+00 : f32
    %9 = vector.broadcast %cst : f32 to vector<32x128xf32>
    %10 = arith.maximumf %8, %9 : vector<32x128xf32>
    %11 = vector.extract_strided_slice %10 {offsets = [0, 0], sizes = [16, 128], strides = [1, 1]} : vector<32x128xf32> to vector<16x128xf32>
    %12 = vector.extract_strided_slice %11 {offsets = [0, 0], sizes = [16, 16], strides = [1, 1]} : vector<16x128xf32> to vector<16x16xf32>
    %c0_6 = arith.constant 0 : index
    %c0_7 = arith.constant 0 : index
    %c0_8 = arith.constant 0 : index
    %c0_9 = arith.constant 0 : index
    %13 = vector.load %arg4[%c0_6, %c0_7, %c0_8, %c0_9] : memref<2x8x16x16xf32, #tpu.memory_space<vmem>>, vector<1x1x16x16xf32>
    %14 = vector.shape_cast %13 : vector<1x1x16x16xf32> to vector<16x16xf32>
    %15 = vector.shape_cast %12 : vector<16x16xf32> to vector<1x1x16x16xf32>
    tpu.vector_store %arg4[%c0_6, %c0_7, %c0_8, %c0_9], %15 {strides = array<i32>} : memref<2x8x16x16xf32, #tpu.memory_space<vmem>>, vector<1x1x16x16xf32>,
    %16 = vector.extract_strided_slice %11 {offsets = [0, 16], sizes = [16, 16], strides = [1, 1]} : vector<16x128xf32> to vector<16x16xf32>
    %c0_10 = arith.constant 0 : index
    %c1 = arith.constant 1 : index
    %c0_11 = arith.constant 0 : index
    %c0_12 = arith.constant 0 : index
    %17 = vector.load %arg4[%c0_10, %c1, %c0_11, %c0_12] : memref<2x8x16x16xf32, #tpu.memory_space<vmem>>, vector<1x1x16x16xf32>
    %18 = vector.shape_cast %17 : vector<1x1x16x16xf32> to vector<16x16xf32>
    %19 = vector.shape_cast %16 : vector<16x16xf32> to vector<1x1x16x16xf32>
    tpu.vector_store %arg4[%c0_10, %c1, %c0_11, %c0_12], %19 {strides = array<i32>} : memref<2x8x16x16xf32, #tpu.memory_space<vmem>>, vector<1x1x16x16xf32>,
    %20 = vector.extract_strided_slice %11 {offsets = [0, 32], sizes = [16, 16], strides = [1, 1]} : vector<16x128xf32> to vector<16x16xf32>
    %c0_13 = arith.constant 0 : index
    %c2 = arith.constant 2 : index
    %c0_14 = arith.constant 0 : index
    %c0_15 = arith.constant 0 : index
    %21 = vector.load %arg4[%c0_13, %c2, %c0_14, %c0_15] : memref<2x8x16x16xf32, #tpu.memory_space<vmem>>, vector<1x1x16x16xf32>
    %22 = vector.shape_cast %21 : vector<1x1x16x16xf32> to vector<16x16xf32>
    %23 = vector.shape_cast %20 : vector<16x16xf32> to vector<1x1x16x16xf32>
    tpu.vector_store %arg4[%c0_13, %c2, %c0_14, %c0_15], %23 {strides = array<i32>} : memref<2x8x16x16xf32, #tpu.memory_space<vmem>>, vector<1x1x16x16xf32>,
    %24 = vector.extract_strided_slice %11 {offsets = [0, 48], sizes = [16, 16], strides = [1, 1]} : vector<16x128xf32> to vector<16x16xf32>
    %c0_16 = arith.constant 0 : index
    %c3 = arith.constant 3 : index
    %c0_17 = arith.constant 0 : index
    %c0_18 = arith.constant 0 : index
    %25 = vector.load %arg4[%c0_16, %c3, %c0_17, %c0_18] : memref<2x8x16x16xf32, #tpu.memory_space<vmem>>, vector<1x1x16x16xf32>
    %26 = vector.shape_cast %25 : vector<1x1x16x16xf32> to vector<16x16xf32>
    %27 = vector.shape_cast %24 : vector<16x16xf32> to vector<1x1x16x16xf32>
    tpu.vector_store %arg4[%c0_16, %c3, %c0_17, %c0_18], %27 {strides = array<i32>} : memref<2x8x16x16xf32, #tpu.memory_space<vmem>>, vector<1x1x16x16xf32>,
    %28 = vector.extract_strided_slice %11 {offsets = [0, 64], sizes = [16, 16], strides = [1, 1]} : vector<16x128xf32> to vector<16x16xf32>
    %c0_19 = arith.constant 0 : index
    %c4 = arith.constant 4 : index
    %c0_20 = arith.constant 0 : index
    %c0_21 = arith.constant 0 : index
    %29 = vector.load %arg4[%c0_19, %c4, %c0_20, %c0_21] : memref<2x8x16x16xf32, #tpu.memory_space<vmem>>, vector<1x1x16x16xf32>
    %30 = vector.shape_cast %29 : vector<1x1x16x16xf32> to vector<16x16xf32>
    %31 = vector.shape_cast %28 : vector<16x16xf32> to vector<1x1x16x16xf32>
    tpu.vector_store %arg4[%c0_19, %c4, %c0_20, %c0_21], %31 {strides = array<i32>} : memref<2x8x16x16xf32, #tpu.memory_space<vmem>>, vector<1x1x16x16xf32>,
    %32 = vector.extract_strided_slice %11 {offsets = [0, 80], sizes = [16, 16], strides = [1, 1]} : vector<16x128xf32> to vector<16x16xf32>
    %c0_22 = arith.constant 0 : index
    %c5 = arith.constant 5 : index
    %c0_23 = arith.constant 0 : index
    %c0_24 = arith.constant 0 : index
    %33 = vector.load %arg4[%c0_22, %c5, %c0_23, %c0_24] : memref<2x8x16x16xf32, #tpu.memory_space<vmem>>, vector<1x1x16x16xf32>
    %34 = vector.shape_cast %33 : vector<1x1x16x16xf32> to vector<16x16xf32>
    %35 = vector.shape_cast %32 : vector<16x16xf32> to vector<1x1x16x16xf32>
    tpu.vector_store %arg4[%c0_22, %c5, %c0_23, %c0_24], %35 {strides = array<i32>} : memref<2x8x16x16xf32, #tpu.memory_space<vmem>>, vector<1x1x16x16xf32>,
    %36 = vector.extract_strided_slice %11 {offsets = [0, 96], sizes = [16, 16], strides = [1, 1]} : vector<16x128xf32> to vector<16x16xf32>
    %c0_25 = arith.constant 0 : index
    %c6 = arith.constant 6 : index
    %c0_26 = arith.constant 0 : index
    %c0_27 = arith.constant 0 : index
    %37 = vector.load %arg4[%c0_25, %c6, %c0_26, %c0_27] : memref<2x8x16x16xf32, #tpu.memory_space<vmem>>, vector<1x1x16x16xf32>
    %38 = vector.shape_cast %37 : vector<1x1x16x16xf32> to vector<16x16xf32>
    %39 = vector.shape_cast %36 : vector<16x16xf32> to vector<1x1x16x16xf32>
    tpu.vector_store %arg4[%c0_25, %c6, %c0_26, %c0_27], %39 {strides = array<i32>} : memref<2x8x16x16xf32, #tpu.memory_space<vmem>>, vector<1x1x16x16xf32>,
    %40 = vector.extract_strided_slice %11 {offsets = [0, 112], sizes = [16, 16], strides = [1, 1]} : vector<16x128xf32> to vector<16x16xf32>
    %c0_28 = arith.constant 0 : index
    %c7 = arith.constant 7 : index
    %c0_29 = arith.constant 0 : index
    %c0_30 = arith.constant 0 : index
    %41 = vector.load %arg4[%c0_28, %c7, %c0_29, %c0_30] : memref<2x8x16x16xf32, #tpu.memory_space<vmem>>, vector<1x1x16x16xf32>
    %42 = vector.shape_cast %41 : vector<1x1x16x16xf32> to vector<16x16xf32>
    %43 = vector.shape_cast %40 : vector<16x16xf32> to vector<1x1x16x16xf32>
    tpu.vector_store %arg4[%c0_28, %c7, %c0_29, %c0_30], %43 {strides = array<i32>} : memref<2x8x16x16xf32, #tpu.memory_space<vmem>>, vector<1x1x16x16xf32>,
    %44 = vector.extract_strided_slice %10 {offsets = [16, 0], sizes = [16, 128], strides = [1, 1]} : vector<32x128xf32> to vector<16x128xf32>
    %45 = vector.extract_strided_slice %44 {offsets = [0, 0], sizes = [16, 16], strides = [1, 1]} : vector<16x128xf32> to vector<16x16xf32>
    %c1_31 = arith.constant 1 : index
    %c0_32 = arith.constant 0 : index
    %c0_33 = arith.constant 0 : index
    %c0_34 = arith.constant 0 : index
    %46 = vector.load %arg4[%c1_31, %c0_32, %c0_33, %c0_34] : memref<2x8x16x16xf32, #tpu.memory_space<vmem>>, vector<1x1x16x16xf32>
    %47 = vector.shape_cast %46 : vector<1x1x16x16xf32> to vector<16x16xf32>
    %48 = vector.shape_cast %45 : vector<16x16xf32> to vector<1x1x16x16xf32>
    tpu.vector_store %arg4[%c1_31, %c0_32, %c0_33, %c0_34], %48 {strides = array<i32>} : memref<2x8x16x16xf32, #tpu.memory_space<vmem>>, vector<1x1x16x16xf32>,
    %49 = vector.extract_strided_slice %44 {offsets = [0, 16], sizes = [16, 16], strides = [1, 1]} : vector<16x128xf32> to vector<16x16xf32>
    %c1_35 = arith.constant 1 : index
    %c1_36 = arith.constant 1 : index
    %c0_37 = arith.constant 0 : index
    %c0_38 = arith.constant 0 : index
    %50 = vector.load %arg4[%c1_35, %c1_36, %c0_37, %c0_38] : memref<2x8x16x16xf32, #tpu.memory_space<vmem>>, vector<1x1x16x16xf32>
    %51 = vector.shape_cast %50 : vector<1x1x16x16xf32> to vector<16x16xf32>
    %52 = vector.shape_cast %49 : vector<16x16xf32> to vector<1x1x16x16xf32>
    tpu.vector_store %arg4[%c1_35, %c1_36, %c0_37, %c0_38], %52 {strides = array<i32>} : memref<2x8x16x16xf32, #tpu.memory_space<vmem>>, vector<1x1x16x16xf32>,
    %53 = vector.extract_strided_slice %44 {offsets = [0, 32], sizes = [16, 16], strides = [1, 1]} : vector<16x128xf32> to vector<16x16xf32>
    %c1_39 = arith.constant 1 : index
    %c2_40 = arith.constant 2 : index
    %c0_41 = arith.constant 0 : index
    %c0_42 = arith.constant 0 : index
    %54 = vector.load %arg4[%c1_39, %c2_40, %c0_41, %c0_42] : memref<2x8x16x16xf32, #tpu.memory_space<vmem>>, vector<1x1x16x16xf32>
    %55 = vector.shape_cast %54 : vector<1x1x16x16xf32> to vector<16x16xf32>
    %56 = vector.shape_cast %53 : vector<16x16xf32> to vector<1x1x16x16xf32>
    tpu.vector_store %arg4[%c1_39, %c2_40, %c0_41, %c0_42], %56 {strides = array<i32>} : memref<2x8x16x16xf32, #tpu.memory_space<vmem>>, vector<1x1x16x16xf32>,
    %57 = vector.extract_strided_slice %44 {offsets = [0, 48], sizes = [16, 16], strides = [1, 1]} : vector<16x128xf32> to vector<16x16xf32>
    %c1_43 = arith.constant 1 : index
    %c3_44 = arith.constant 3 : index
    %c0_45 = arith.constant 0 : index
    %c0_46 = arith.constant 0 : index
    %58 = vector.load %arg4[%c1_43, %c3_44, %c0_45, %c0_46] : memref<2x8x16x16xf32, #tpu.memory_space<vmem>>, vector<1x1x16x16xf32>
    %59 = vector.shape_cast %58 : vector<1x1x16x16xf32> to vector<16x16xf32>
    %60 = vector.shape_cast %57 : vector<16x16xf32> to vector<1x1x16x16xf32>
    tpu.vector_store %arg4[%c1_43, %c3_44, %c0_45, %c0_46], %60 {strides = array<i32>} : memref<2x8x16x16xf32, #tpu.memory_space<vmem>>, vector<1x1x16x16xf32>,
    %61 = vector.extract_strided_slice %44 {offsets = [0, 64], sizes = [16, 16], strides = [1, 1]} : vector<16x128xf32> to vector<16x16xf32>
    %c1_47 = arith.constant 1 : index
    %c4_48 = arith.constant 4 : index
    %c0_49 = arith.constant 0 : index
    %c0_50 = arith.constant 0 : index
    %62 = vector.load %arg4[%c1_47, %c4_48, %c0_49, %c0_50] : memref<2x8x16x16xf32, #tpu.memory_space<vmem>>, vector<1x1x16x16xf32>
    %63 = vector.shape_cast %62 : vector<1x1x16x16xf32> to vector<16x16xf32>
    %64 = vector.shape_cast %61 : vector<16x16xf32> to vector<1x1x16x16xf32>
    tpu.vector_store %arg4[%c1_47, %c4_48, %c0_49, %c0_50], %64 {strides = array<i32>} : memref<2x8x16x16xf32, #tpu.memory_space<vmem>>, vector<1x1x16x16xf32>,
    %65 = vector.extract_strided_slice %44 {offsets = [0, 80], sizes = [16, 16], strides = [1, 1]} : vector<16x128xf32> to vector<16x16xf32>
    %c1_51 = arith.constant 1 : index
    %c5_52 = arith.constant 5 : index
    %c0_53 = arith.constant 0 : index
    %c0_54 = arith.constant 0 : index
    %66 = vector.load %arg4[%c1_51, %c5_52, %c0_53, %c0_54] : memref<2x8x16x16xf32, #tpu.memory_space<vmem>>, vector<1x1x16x16xf32>
    %67 = vector.shape_cast %66 : vector<1x1x16x16xf32> to vector<16x16xf32>
    %68 = vector.shape_cast %65 : vector<16x16xf32> to vector<1x1x16x16xf32>
    tpu.vector_store %arg4[%c1_51, %c5_52, %c0_53, %c0_54], %68 {strides = array<i32>} : memref<2x8x16x16xf32, #tpu.memory_space<vmem>>, vector<1x1x16x16xf32>,
    %69 = vector.extract_strided_slice %44 {offsets = [0, 96], sizes = [16, 16], strides = [1, 1]} : vector<16x128xf32> to vector<16x16xf32>
    %c1_55 = arith.constant 1 : index
    %c6_56 = arith.constant 6 : index
    %c0_57 = arith.constant 0 : index
    %c0_58 = arith.constant 0 : index
    %70 = vector.load %arg4[%c1_55, %c6_56, %c0_57, %c0_58] : memref<2x8x16x16xf32, #tpu.memory_space<vmem>>, vector<1x1x16x16xf32>
    %71 = vector.shape_cast %70 : vector<1x1x16x16xf32> to vector<16x16xf32>
    %72 = vector.shape_cast %69 : vector<16x16xf32> to vector<1x1x16x16xf32>
    tpu.vector_store %arg4[%c1_55, %c6_56, %c0_57, %c0_58], %72 {strides = array<i32>} : memref<2x8x16x16xf32, #tpu.memory_space<vmem>>, vector<1x1x16x16xf32>,
    %73 = vector.extract_strided_slice %44 {offsets = [0, 112], sizes = [16, 16], strides = [1, 1]} : vector<16x128xf32> to vector<16x16xf32>
    %c1_59 = arith.constant 1 : index
    %c7_60 = arith.constant 7 : index
    %c0_61 = arith.constant 0 : index
    %c0_62 = arith.constant 0 : index
    %74 = vector.load %arg4[%c1_59, %c7_60, %c0_61, %c0_62] : memref<2x8x16x16xf32, #tpu.memory_space<vmem>>, vector<1x1x16x16xf32>
    %75 = vector.shape_cast %74 : vector<1x1x16x16xf32> to vector<16x16xf32>
    %76 = vector.shape_cast %73 : vector<16x16xf32> to vector<1x1x16x16xf32>
    tpu.vector_store %arg4[%c1_59, %c7_60, %c0_61, %c0_62], %76 {strides = array<i32>} : memref<2x8x16x16xf32, #tpu.memory_space<vmem>>, vector<1x1x16x16xf32>,
    return
  }
  func.func @transform_0(%arg0: i32) -> (i32, i32, i32) {
    %c0_i32 = arith.constant 0 : i32
    %c0_i32_0 = arith.constant 0 : i32
    %c0_i32_1 = arith.constant 0 : i32
    return %arg0, %c0_i32, %c0_i32_0 : i32, i32, i32
  }
  func.func @transform_1(%arg0: i32) -> (i32, i32) {
    %c0_i32 = arith.constant 0 : i32
    %c0_i32_0 = arith.constant 0 : i32
    %c0_i32_1 = arith.constant 0 : i32
    return %c0_i32, %c0_i32_0 : i32, i32
  }
  func.func @transform_2(%arg0: i32) -> (i32, i32) {
    %c0_i32 = arith.constant 0 : i32
    %c0_i32_0 = arith.constant 0 : i32
    %c0_i32_1 = arith.constant 0 : i32
    return %c0_i32, %c0_i32_0 : i32, i32
  }
  func.func @transform_3(%arg0: i32) -> (i32, i32, i32, i32) {
    %c0_i32 = arith.constant 0 : i32
    %c0_i32_0 = arith.constant 0 : i32
    %c0_i32_1 = arith.constant 0 : i32
    %c0_i32_2 = arith.constant 0 : i32
    return %arg0, %c0_i32, %c0_i32_0, %c0_i32_1 : i32, i32, i32, i32
  }
}

</mosaic_0001>

<bundles_post_ra>
// kernel: squeeze.4
= control target key start
LH: loop header
LB: loop body
LE: loop exit
PB: predicated region body
PF: predicated region fallthrough
CT: control target
= control target key end

     0   :  { %s67_s8 = smov 80   ;;  %vm8_vm0 = vcmask 130048   ;;  %s68_s11 = smov 96   ;;  %s118_s0 = inlined_call_operand.vmem [shape: f32[128], index: 0, kind: input, shape index: {}]   ;;  %s119_s1 = inlined_call_operand.vmem [shape: f32[8,16], index: 1, kind: output, shape index: {}]  }
   0x1   :  { %v5_v0 = vld [vmem:[%s118_s0] sm:$0x1]  ;;  %s66_s0 = smov 112   ;;  %s69_s12 = smov 64  }
   0x2   :  { %6 = vst [vmem:[#allocation0] sm:$0x1] %v5_v0  ;;  %s70_s13 = smov 48   ;;  %s71_s14 = smov 32  }
   0x3   :  { %s72_s15 = smov 16  }
   0x9   :  { %v10_v1 = vld [vmem:[#allocation0] sm:$0x1]  }
   0xa   :  { %v22_v2 = vld [vmem:[#allocation0] sm:$0x1]   ;;  %11 = vrot.lane.b32.xlu0 %v10_v1, %s66_s0 }
   0xb   :  { %23 = vrot.lane.b32.xlu1 %v22_v2, %s67_s8  ;;  %v16_v3 = vld [vmem:[#allocation0] sm:$0x1]  }
   0xc   :  { %v28_v4 = vld [vmem:[#allocation0] sm:$0x1]  }
   0xd   :  { %v7_v5 = vld [vmem:[#allocation0] sm:$0x1]  }
   0xe   :  { %9 = vst.msk [vmem:[%s119_s1] sm:$0x1] %vm8_vm0, %v7_v5   ;;  %17 = vrot.lane.b32.xlu0 %v16_v3, %s68_s11  ;;  %v34_v6 = vld [vmem:[#allocation0] sm:$0x1]  }
   0xf   :  { %29 = vrot.lane.b32.xlu1 %v28_v4, %s69_s12  ;;  %v40_v7 = vld [vmem:[#allocation0] sm:$0x1]  }
  0x10   :  { %v46_v8 = vld [vmem:[#allocation0] sm:$0x1]  }
  0x12   :  { %35 = vrot.lane.b32.xlu0 %v34_v6, %s70_s13 }
  0x13   :  { %41 = vrot.lane.b32.xlu1 %v40_v7, %s71_s14 }
  0x16   :  { %47 = vrot.lane.b32.xlu0 %v46_v8, %s72_s15 }
  0x7c   :  { %v12_v9 = vpop.permute.xlu0 %11  }
  0x7d   :  { %v24_v10 = vpop.permute.xlu1 %23   ;;  %52 = vst.msk [vmem:[%s119_s1 + $0x1] sm:$0x1] %vm8_vm0, %v12_v9  }
  0x7e   :  { %54 = vst.msk [vmem:[%s119_s1 + $0x3] sm:$0x1] %vm8_vm0, %v24_v10  }
  0x80   :  { %v18_v11 = vpop.permute.xlu0 %17  }
  0x81   :  { %v30_v12 = vpop.permute.xlu1 %29   ;;  %53 = vst.msk [vmem:[%s119_s1 + $0x2] sm:$0x1] %vm8_vm0, %v18_v11  }
  0x82   :  { %55 = vst.msk [vmem:[%s119_s1 + $0x4] sm:$0x1] %vm8_vm0, %v30_v12  }
  0x84   :  { %v36_v13 = vpop.permute.xlu0 %35  }
  0x85   :  { %v42_v14 = vpop.permute.xlu1 %41   ;;  %56 = vst.msk [vmem:[%s119_s1 + $0x5] sm:$0x1] %vm8_vm0, %v36_v13  }
  0x86   :  { %57 = vst.msk [vmem:[%s119_s1 + $0x6] sm:$0x1] %vm8_vm0, %v42_v14  }
  0x88   :  { %v48_v15 = vpop.permute.xlu0 %47  }
  0x89   :  { %58 = vst.msk [vmem:[%s119_s1 + $0x7] sm:$0x1] %vm8_vm0, %v48_v15  }

// kernel: conv_module_forward.3
= control target key start
LH: loop header
LB: loop body
LE: loop exit
PB: predicated region body
PF: predicated region fallthrough
CT: control target
= control target key end

     0   :  { %vm14_vm0 = vcmask 516096   ;;  %vm27_vm1 = vcmask 130049   ;;  %s617_s16 = smov 64   ;;  %vm21_vm2 = vcmask 1040384   ;;  %v618_v5 = vmov 0.0   ;;  %s619_s21 = smov 16   ;;  %s915_s0 = inlined_call_operand.vmem [shape: f32[2,4,16,16], index: 0, kind: input, shape index: {}]   ;;  %s916_s1 = inlined_call_operand.vmem [shape: bf16[192,128], index: 1, kind: input, shape index: {}]   ;;  %s917_s3 = inlined_call_operand.vmem [shape: f32[2,128], index: 3, kind: output, shape index: {1}]   ;;  %s918_s2 = inlined_call_operand.vmem [shape: bf16[2,16,128], index: 2, kind: output, shape index: {0}]  }
   0x1   :  { %v17_v0 = vld [vmem:[%s915_s0] sm:$0xff]  ;;  %v525_v1 = vld [vmem:[%s915_s0 + $0x10] sm:$0xff]  ;;  %v526_v4 = vld [vmem:[%s915_s0 + $0x18] sm:$0xff]  ;;  %15 = vst.msk [vmem:[#allocation2] sm:$0x1] %vm14_vm0, %v618_v5  ;;  %vm40_vm3 = vcmask 1046528  }
   0x2   :  { %31 = vrot.lane.b32.xlu0 %v17_v0, %s617_s16  ;;  %v22_v2 = vrot.slane %v17_v0, 7  ;;  %v54_v3 = vrot.slane %v525_v1, 7  ;;  %16 = vst.msk [vmem:[#allocation2 + $0x1f] sm:$0x1] %vm14_vm0, %v618_v5  ;;  %167 = vst.msk [vmem:[#allocation2 + $0x3f] sm:$0x1] %vm14_vm0, %v618_v5 }
   0x3   :  { %166 = vst.msk [vmem:[#allocation2 + $0x20] sm:$0x1] %vm14_vm0, %v618_v5  ;;  %v18_v6 = vld [vmem:[%s915_s0 + $0x8] sm:$0xff]  ;;  %v55_v7 = vrot.slane %v526_v4, 7  ;;  %v669_v9 = vld [vmem:[%s915_s0 + $0x40] sm:$0xff]  ;;  %v76_v11 = vrot.slane %v525_v1, 1 }
   0x4   :  { %28 = vst.msk [vmem:[#allocation2] sm:$0xfe] %vm27_vm1, %v22_v2  ;;  %57 = vrot.lane.b32.xlu1 %v54_v3, %s619_s21  ;;  %v173_v10 = vrot.slane %v669_v9, 7  ;;  %v77_v12 = vrot.slane %v526_v4, 1  ;;  %v678_v13 = vld [vmem:[%s915_s0 + $0x70] sm:$0xff]  ;;  %v683_v14 = vld [vmem:[%s915_s0 + $0x78] sm:$0xff] }
   0x5   :  { %v56_v8 = vsel %vm21_vm2, %v54_v3, %v55_v7  ;;  %v41_v15 = vrot.slane %v17_v0, 1  ;;  %v23_v16 = vrot.slane %v18_v6, 7  ;;  %v527_v17 = vld [vmem:[%s915_s0 + $0x20] sm:$0xff]  ;;  %v528_v18 = vld [vmem:[%s915_s0 + $0x28] sm:$0xff]  ;;  %v42_v19 = vrot.slane %v18_v6, 1  ;;  %s620_s5 = smov 80  }
   0x6   :  { %33 = vrot.lane.b32.xlu0 %v18_v6, %s617_s16  ;;  %178 = vst.msk [vmem:[#allocation2 + $0x20] sm:$0xfe] %vm27_vm1, %v173_v10  ;;  %v695_v20 = vld [vmem:[%s915_s0 + $0x48] sm:$0xff]  ;;  %v78_v21 = vsel %vm40_vm3, %v76_v11, %v77_v12  ;;  %v270_v23 = vrot.slane %v678_v13, 7  ;;  %v271_v24 = vrot.slane %v683_v14, 7  ;;  %v93_v25 = vrot.slane %v527_v17, 7 }
   0x7   :  { %v189_v22 = vrot.slane %v695_v20, 1  ;;  %v174_v26 = vrot.slane %v695_v20, 7  ;;  %v605_v27 = vld [vmem:[%s916_s1 + $0x38] sm:$0xff]   ;;  %v94_v28 = vrot.slane %v528_v18, 7  ;;  %vm29_vm4 = vcmask 130048   ;;  %v606_v34 = vld [vmem:[%s916_s1 + $0x30] sm:$0xff]  }
   0x8   :  { %59 = vrot.lane.b32.xlu1 %v56_v8, %s619_s21  ;;  %v709_v29 = vsel %vm21_vm2, %v270_v23, %v271_v24  ;;  %v24_v30 = vsel %vm21_vm2, %v22_v2, %v23_v16  ;;  %vm47_vm5 = vcmask 129024   ;;  %v621_v31 = vmov 0   ;;  %s622_s12 = smov 32   ;;  %v607_v38 = vld [vmem:[%s916_s1 + $0x28] sm:$0xff]   ;;  %s623_s15 = smov 96   ;;  %v608_v40 = vld [vmem:[%s916_s1 + $0x20] sm:$0xff]  }
   0x9   :  { %30 = vst.msk [vmem:[#allocation2 + $0x10] sm:$0xff] %vm29_vm4, %v24_v30  ;;  %415 = vmatprep.subr.bf16.mxu0 %v621_v31  ;;  %v43_v32 = vsel %vm40_vm3, %v41_v15, %v42_v19  ;;  %572 = vmatprep.subr.bf16.mxu1 %v621_v31  ;;  %v116_v33 = vrot.slane %v528_v18, 1  ;;  %v175_v35 = vsel %vm21_vm2, %v173_v10, %v174_v26  ;;  %v115_v37 = vrot.slane %v527_v17, 1  ;;  %v529_v41 = vld [vmem:[%s915_s0 + $0x30] sm:$0xff]  ;;  %v530_v42 = vld [vmem:[%s915_s0 + $0x38] sm:$0xff]  ;;  %s624_s28 = smov 48  }
   0xa   :  { %67 = vrot.lane.b32.xlu0 %v525_v1, %s620_s5  ;;  %48 = vst.msk [vmem:[#allocation2 + $0x18] sm:$0x7f] %vm47_vm5, %v42_v19  ;;  %194 = vst.msk [vmem:[#allocation2 + $0x38] sm:$0x7f] %vm47_vm5, %v189_v22  ;;  %416 = vmatpush1.bf16.msra.mxu0 %v605_v27  ;;  %v95_v36 = vsel %vm21_vm2, %v93_v25, %v94_v28  ;;  %v609_v43 = vld [vmem:[%s916_s1 + $0x18] sm:$0xff]   ;;  %v132_v44 = vrot.slane %v529_v41, 7 }
   0xb   :  { %46 = vst.msk [vmem:[#allocation2 + $0x8] sm:$0xff] %vm29_vm4, %v43_v32  ;;  %417 = vmatprep.subr.bf16.mxu0 %v621_v31  ;;  %179 = vst.msk [vmem:[#allocation2 + $0x30] sm:$0xff] %vm29_vm4, %v175_v35  ;;  %584 = vmatpush1.bf16.msra.mxu1 %v605_v27  ;;  %v117_v39 = vsel %vm40_vm3, %v115_v37, %v116_v33  ;;  %v133_v45 = vrot.slane %v530_v42, 7  ;;  %v155_v46 = vrot.slane %v530_v42, 1  ;;  %v154_v47 = vrot.slane %v529_v41, 1  ;;  %v610_v48 = vld [vmem:[%s916_s1 + $0x10] sm:$0xff]  }
   0xc   :  { %69 = vrot.lane.b32.xlu1 %v526_v4, %s620_s5  ;;  %573 = vmatprep.subr.bf16.mxu1 %v621_v31  ;;  %v533_v50 = vld [vmem:[%s915_s0 + $0x50] sm:$0xff]  ;;  %v534_v51 = vld [vmem:[%s915_s0 + $0x58] sm:$0xff]  ;;  %v611_v53 = vld [vmem:[%s916_s1 + $0x8] sm:$0xff]   ;;  %v188_v54 = vrot.slane %v669_v9, 1  ;;  %s625_s13 = smov 112   ;;  %v289_v15 = vrot.slane %v678_v13, 1 }
   0xd   :  { %v134_v49 = vsel %vm21_vm2, %v132_v44, %v133_v45  ;;  %v156_v52 = vsel %vm40_vm3, %v154_v47, %v155_v46  ;;  %v200_v55 = vrot.slane %v533_v50, 7  ;;  %v201_v56 = vrot.slane %v534_v51, 7  ;;  %v612_v57 = vld [vmem:[%s916_s1] sm:$0xff]   ;;  %v613_v60 = vld [vmem:[%s916_s1 + $0x58] sm:$0xff]   ;;  %v614_v63 = vld [vmem:[%s916_s1 + $0x50] sm:$0xff]   ;;  %488 = vst [vmem:[%s917_s3] sm:$0x3] %v618_v5 }
   0xe   :  { %79 = vrot.lane.b32.xlu0 %v78_v21, %s619_s21  ;;  %418 = vmatpush1.bf16.msra.mxu0 %v606_v34  ;;  %v190_v59 = vsel %vm40_vm3, %v188_v54, %v189_v22  ;;  %v220_v61 = vrot.slane %v534_v51, 1  ;;  %v219_v62 = vrot.slane %v533_v50, 1  ;;  %v535_v0 = vld [vmem:[%s915_s0 + $0x60] sm:$0xff]  ;;  %v536_v1 = vld [vmem:[%s915_s0 + $0x68] sm:$0xff]  ;;  %vm37_vm6 = vcmask 654848  }
   0xf   :  { %419 = vmatprep.subr.bf16.mxu0 %v621_v31  ;;  %585 = vmatpush1.bf16.msra.mxu1 %v606_v34  ;;  %v202_v58 = vsel %vm21_vm2, %v200_v55, %v201_v56  ;;  %193 = vst.msk [vmem:[#allocation2 + $0x28] sm:$0xff] %vm29_vm4, %v190_v59  ;;  %v615_v3 = vld [vmem:[%s916_s1 + $0x48] sm:$0xff]   ;;  %v235_v4 = vrot.slane %v535_v0, 7  ;;  %v236_v6 = vrot.slane %v536_v1, 7  ;;  %v616_v7 = vld [vmem:[%s916_s1 + $0x40] sm:$0xff]   ;;  %v254_v10 = vrot.slane %v535_v0, 1 }
  0x10   :  { %81 = vrot.lane.b32.xlu1 %v77_v12, %s619_s21  ;;  %574 = vmatprep.subr.bf16.mxu1 %v621_v31  ;;  %v221_v2 = vsel %vm40_vm3, %v219_v62, %v220_v61  ;;  %v290_v12 = vrot.slane %v683_v14, 1  ;;  %vm63_vm7 = vcmask 261249   ;;  %vm65_vm8 = vcmask 261248  }
  0x11   :  { %v237_v8 = vsel %vm21_vm2, %v235_v4, %v236_v6  ;;  %vm73_vm9 = vcmask 786048   ;;  %vm86_vm10 = vcmask 260224   ;;  %vm102_vm11 = vcmask 392449  }
  0x12   :  { %96 = vrot.lane.b32.xlu0 %v93_v25, %s622_s12  ;;  %420 = vmatpush1.bf16.msra.mxu0 %v607_v38  ;;  %v291_v16 = vsel %vm40_vm3, %v289_v15, %v290_v12  ;;  %vm104_vm12 = vcmask 392448   ;;  %vm112_vm13 = vcmask 917248   ;;  %vm125_vm14 = vcmask 391424  }
  0x13   :  { %421 = vmatprep.subr.bf16.mxu0 %v621_v31  ;;  %586 = vmatpush1.bf16.msra.mxu1 %v607_v38  ;;  %vm141_vm15 = vcmask 523649   ;;  %vm143_vm0 = vcmask 523648   ;;  %vm164_vm1 = vcmask 522624   ;;  %vm151_vm2 = vcmask 1048448  }
  0x14   :  { %98 = vrot.lane.b32.xlu1 %v95_v36, %s622_s12  ;;  %575 = vmatprep.subr.bf16.mxu1 %v621_v31 }
  0x16   :  { %106 = vrot.lane.b32.xlu0 %v527_v17, %s623_s15  ;;  %422 = vmatpush1.bf16.msra.mxu0 %v608_v40 }
  0x17   :  { %423 = vmatprep.subr.bf16.mxu0 %v621_v31  ;;  %587 = vmatpush1.bf16.msra.mxu1 %v608_v40 }
  0x18   :  { %108 = vrot.lane.b32.xlu1 %v528_v18, %s623_s15  ;;  %576 = vmatprep.subr.bf16.mxu1 %v621_v31 }
  0x1a   :  { %118 = vrot.lane.b32.xlu0 %v117_v39, %s622_s12  ;;  %424 = vmatpush1.bf16.msra.mxu0 %v609_v43 }
  0x1b   :  { %425 = vmatprep.subr.bf16.mxu0 %v621_v31  ;;  %588 = vmatpush1.bf16.msra.mxu1 %v609_v43 }
  0x1c   :  { %120 = vrot.lane.b32.xlu1 %v116_v33, %s622_s12  ;;  %577 = vmatprep.subr.bf16.mxu1 %v621_v31 }
  0x1e   :  { %180 = vrot.lane.b32.xlu0 %v669_v9, %s617_s16  ;;  %426 = vmatpush1.bf16.msra.mxu0 %v610_v48  ;;  %v255_v9 = vrot.slane %v536_v1, 1 }
  0x1f   :  { %427 = vmatprep.subr.bf16.mxu0 %v621_v31  ;;  %589 = vmatpush1.bf16.msra.mxu1 %v610_v48 }
  0x20   :  { %182 = vrot.lane.b32.xlu1 %v695_v20, %s617_s16  ;;  %578 = vmatprep.subr.bf16.mxu1 %v621_v31  ;;  %v256_v11 = vsel %vm40_vm3, %v254_v10, %v255_v9  ;;  %vm408_vm3 = vcmask 523264  }
  0x22   :  { %135 = vrot.lane.b32.xlu0 %v132_v44, %s624_s28  ;;  %428 = vmatpush1.bf16.msra.mxu0 %v611_v53 }
  0x23   :  { %429 = vmatprep.subr.bf16.mxu0 %v621_v31  ;;  %590 = vmatpush1.bf16.msra.mxu1 %v611_v53 }
  0x24   :  { %137 = vrot.lane.b32.xlu1 %v134_v49, %s624_s28  ;;  %579 = vmatprep.subr.bf16.mxu1 %v621_v31 }
  0x26   :  { %157 = vrot.lane.b32.xlu0 %v156_v52, %s624_s28  ;;  %430 = vmatpush1.bf16.msra.mxu0 %v612_v57 }
  0x27   :  { %439 = vmatprep.subr.bf16.mxu0 %v621_v31  ;;  %591 = vmatpush1.bf16.msra.mxu1 %v612_v57 }
  0x28   :  { %159 = vrot.lane.b32.xlu1 %v155_v46, %s624_s28  ;;  %580 = vmatprep.subr.bf16.mxu1 %v621_v31 }
  0x2a   :  { %203 = vrot.lane.b32.xlu0 %v200_v55, %s619_s21  ;;  %440 = vmatpush2.bf16.msra.mxu0 %v613_v60 }
  0x2b   :  { %441 = vmatprep.subr.bf16.mxu0 %v621_v31  ;;  %592 = vmatpush2.bf16.msra.mxu1 %v613_v60 }
  0x2c   :  { %205 = vrot.lane.b32.xlu1 %v202_v58, %s619_s21  ;;  %581 = vmatprep.subr.bf16.mxu1 %v621_v31 }
  0x2e   :  { %145 = vrot.lane.b32.xlu0 %v529_v41, %s625_s13  ;;  %442 = vmatpush2.bf16.msra.mxu0 %v614_v63 }
  0x2f   :  { %443 = vmatprep.subr.bf16.mxu0 %v621_v31  ;;  %593 = vmatpush2.bf16.msra.mxu1 %v614_v63 }
  0x30   :  { %147 = vrot.lane.b32.xlu1 %v530_v42, %s625_s13  ;;  %582 = vmatprep.subr.bf16.mxu1 %v621_v31 }
  0x32   :  { %211 = vrot.lane.b32.xlu0 %v533_v50, %s620_s5  ;;  %444 = vmatpush2.bf16.msra.mxu0 %v615_v3 }
  0x33   :  { %445 = vmatprep.subr.bf16.mxu0 %v621_v31  ;;  %594 = vmatpush2.bf16.msra.mxu1 %v615_v3 }
  0x34   :  { %213 = vrot.lane.b32.xlu1 %v534_v51, %s620_s5  ;;  %583 = vmatprep.subr.bf16.mxu1 %v621_v31 }
  0x36   :  { %222 = vrot.lane.b32.xlu0 %v221_v2, %s619_s21  ;;  %446 = vmatpush2.bf16.msra.mxu0 %v616_v7 }
  0x37   :  { %595 = vmatpush2.bf16.msra.mxu1 %v616_v7 }
  0x38   :  { %224 = vrot.lane.b32.xlu1 %v220_v61, %s619_s21 }
  0x3a   :  { %238 = vrot.lane.b32.xlu0 %v235_v4, %s622_s12 }
  0x3c   :  { %240 = vrot.lane.b32.xlu1 %v237_v8, %s622_s12 }
  0x3e   :  { %246 = vrot.lane.b32.xlu0 %v535_v0, %s623_s15 }
  0x40   :  { %248 = vrot.lane.b32.xlu1 %v536_v1, %s623_s15 }
  0x42   :  { %257 = vrot.lane.b32.xlu0 %v256_v11, %s622_s12 }
  0x44   :  { %259 = vrot.lane.b32.xlu1 %v255_v9, %s622_s12 }
  0x46   :  { %273 = vrot.lane.b32.xlu0 %v270_v23, %s624_s28 }
  0x48   :  { %275 = vrot.lane.b32.xlu1 %v709_v29, %s624_s28 }
  0x4a   :  { %292 = vrot.lane.b32.xlu0 %v291_v16, %s624_s28 }
  0x4c   :  { %294 = vrot.lane.b32.xlu1 %v290_v12, %s624_s28 }
  0x4e   :  { %281 = vrot.lane.b32.xlu0 %v678_v13, %s625_s13 }
  0x50   :  { %283 = vrot.lane.b32.xlu1 %v683_v14, %s625_s13 }
  0x74   :  { %v32_v17 = vpop.permute.xlu0 %31 }
  0x75   :  { %38 = vst.msk [vmem:[#allocation2] sm:$0xff] %vm37_vm6, %v32_v17 }
  0x76   :  { %v58_v18 = vpop.permute.xlu1 %57 }
  0x77   :  { %64 = vst.msk [vmem:[#allocation2] sm:$0xfe] %vm63_vm7, %v58_v18 }
  0x78   :  { %v34_v19 = vpop.permute.xlu0 %33 }
  0x79   :  { %39 = vst.msk [vmem:[#allocation2 + $0x10] sm:$0xff] %vm37_vm6, %v34_v19 }
  0x7a   :  { %v60_v20 = vpop.permute.xlu1 %59 }
  0x7b   :  { %66 = vst.msk [vmem:[#allocation2 + $0x10] sm:$0xff] %vm65_vm8, %v60_v20 }
  0x7c   :  { %v68_v13 = vpop.permute.xlu0 %67 }
  0x7d   :  { %74 = vst.msk [vmem:[#allocation2] sm:$0xff] %vm73_vm9, %v68_v13 }
  0x7e   :  { %v70_v14 = vpop.permute.xlu1 %69 }
  0x7f   :  { %75 = vst.msk [vmem:[#allocation2 + $0x10] sm:$0xff] %vm73_vm9, %v70_v14 }
  0x80   :  { %v80_v21 = vpop.permute.xlu0 %79 }
  0x81   :  { %85 = vst.msk [vmem:[#allocation2 + $0x8] sm:$0xff] %vm65_vm8, %v80_v21 }
  0x82   :  { %v82_v22 = vpop.permute.xlu1 %81 }
  0x83   :  { %87 = vst.msk [vmem:[#allocation2 + $0x18] sm:$0x7f] %vm86_vm10, %v82_v22 }
  0x84   :  { %v97_v23 = vpop.permute.xlu0 %96 }
  0x85   :  { %103 = vst.msk [vmem:[#allocation2] sm:$0xfe] %vm102_vm11, %v97_v23 }
  0x86   :  { %v99_v24 = vpop.permute.xlu1 %98 }
  0x87   :  { %105 = vst.msk [vmem:[#allocation2 + $0x10] sm:$0xff] %vm104_vm12, %v99_v24 }
  0x88   :  { %v107_v25 = vpop.permute.xlu0 %106 }
  0x89   :  { %113 = vst.msk [vmem:[#allocation2] sm:$0xff] %vm112_vm13, %v107_v25 }
  0x8a   :  { %v109_v26 = vpop.permute.xlu1 %108 }
  0x8b   :  { %114 = vst.msk [vmem:[#allocation2 + $0x10] sm:$0xff] %vm112_vm13, %v109_v26 }
  0x8c   :  { %v119_v27 = vpop.permute.xlu0 %118 }
  0x8d   :  { %124 = vst.msk [vmem:[#allocation2 + $0x8] sm:$0xff] %vm104_vm12, %v119_v27 }
  0x8e   :  { %v121_v28 = vpop.permute.xlu1 %120 }
  0x8f   :  { %126 = vst.msk [vmem:[#allocation2 + $0x18] sm:$0x7f] %vm125_vm14, %v121_v28 }
  0x90   :  { %v181_v29 = vpop.permute.xlu0 %180 }
  0x91   :  { %186 = vst.msk [vmem:[#allocation2 + $0x20] sm:$0xff] %vm37_vm6, %v181_v29 }
  0x92   :  { %v183_v30 = vpop.permute.xlu1 %182 }
  0x93   :  { %187 = vst.msk [vmem:[#allocation2 + $0x30] sm:$0xff] %vm37_vm6, %v183_v30 }
  0x94   :  { %v136_v31 = vpop.permute.xlu0 %135 }
  0x95   :  { %142 = vst.msk [vmem:[#allocation2] sm:$0xfe] %vm141_vm15, %v136_v31 }
  0x96   :  { %v138_v32 = vpop.permute.xlu1 %137 }
  0x97   :  { %144 = vst.msk [vmem:[#allocation2 + $0x10] sm:$0xff] %vm143_vm0, %v138_v32  ;;  %v489_v32 = vld [vmem:[%s917_s3] sm:$0x1] }
  0x98   :  { %v158_v33 = vpop.permute.xlu0 %157 }
  0x99   :  { %163 = vst.msk [vmem:[#allocation2 + $0x8] sm:$0xff] %vm143_vm0, %v158_v33 }
  0x9a   :  { %v160_v34 = vpop.permute.xlu1 %159 }
  0x9b   :  { %165 = vst.msk [vmem:[#allocation2 + $0x18] sm:$0x7f] %vm164_vm1, %v160_v34 }
  0x9c   :  { %v204_v35 = vpop.permute.xlu0 %203 }
  0x9d   :  { %209 = vst.msk [vmem:[#allocation2 + $0x20] sm:$0xfe] %vm63_vm7, %v204_v35  ;;  %v501_v35 = vld [vmem:[%s917_s3 + $0x1] sm:$0x1] }
  0x9e   :  { %v206_v36 = vpop.permute.xlu1 %205 }
  0x9f   :  { %210 = vst.msk [vmem:[#allocation2 + $0x30] sm:$0xff] %vm65_vm8, %v206_v36 }
  0xa0   :  { %v146_v37 = vpop.permute.xlu0 %145  ;;  %v301_v38 = vld [vmem:[#allocation2 + $0x8] sm:$0xff] }
  0xa1   :  { %152 = vst.msk [vmem:[#allocation2] sm:$0xff] %vm151_vm2, %v146_v37 }
  0xa2   :  { %v148_v39 = vpop.permute.xlu1 %147  ;;  %v303_v40 = vld [vmem:[#allocation2 + $0x18] sm:$0xff] }
  0xa3   :  { %153 = vst.msk [vmem:[#allocation2 + $0x10] sm:$0xff] %vm151_vm2, %v148_v39  ;;  %v309_v41 = vpack.c.bf16 %v303_v40, %v301_v38 }
  0xa4   :  { %v212_v42 = vpop.permute.xlu0 %211 }
  0xa5   :  { %551 = vmatprep.mubr.msk.bf16.mxu0 %vm408_vm3, %v309_v41  ;;  %217 = vst.msk [vmem:[#allocation2 + $0x20] sm:$0xff] %vm73_vm9, %v212_v42 }
  0xa6   :  { %v214_v43 = vpop.permute.xlu1 %213 }
  0xa7   :  { %218 = vst.msk [vmem:[#allocation2 + $0x30] sm:$0xff] %vm73_vm9, %v214_v43 }
  0xa8   :  { %v223_v44 = vpop.permute.xlu0 %222  ;;  %v300_v45 = vld [vmem:[#allocation2] sm:$0xff] }
  0xa9   :  { %228 = vst.msk [vmem:[#allocation2 + $0x28] sm:$0xff] %vm65_vm8, %v223_v44 }
  0xaa   :  { %v225_v46 = vpop.permute.xlu1 %224  ;;  %v302_v47 = vld [vmem:[#allocation2 + $0x10] sm:$0xff] }
  0xab   :  { %229 = vst.msk [vmem:[#allocation2 + $0x38] sm:$0x7f] %vm86_vm10, %v225_v46  ;;  %v308_v48 = vpack.c.bf16 %v302_v47, %v300_v45 }
  0xac   :  { %v239_v49 = vpop.permute.xlu0 %238 }
  0xad   :  { %448 = vmatmul.mubr.bf16.vlgmr.msra.gmra.mxu0 %v308_v48  ;;  %244 = vst.msk [vmem:[#allocation2 + $0x20] sm:$0xfe] %vm102_vm11, %v239_v49 }
  0xae   :  { %v241_v50 = vpop.permute.xlu1 %240 }
  0xaf   :  { %245 = vst.msk [vmem:[#allocation2 + $0x30] sm:$0xff] %vm104_vm12, %v241_v50 }
  0xb0   :  { %v247_v51 = vpop.permute.xlu0 %246 }
  0xb1   :  { %252 = vst.msk [vmem:[#allocation2 + $0x20] sm:$0xff] %vm112_vm13, %v247_v51 }
  0xb2   :  { %v249_v52 = vpop.permute.xlu1 %248 }
  0xb3   :  { %253 = vst.msk [vmem:[#allocation2 + $0x30] sm:$0xff] %vm112_vm13, %v249_v52 }
  0xb4   :  { %v258_v53 = vpop.permute.xlu0 %257 }
  0xb5   :  { %263 = vst.msk [vmem:[#allocation2 + $0x28] sm:$0xff] %vm104_vm12, %v258_v53 }
  0xb6   :  { %v260_v54 = vpop.permute.xlu1 %259 }
  0xb7   :  { %264 = vst.msk [vmem:[#allocation2 + $0x38] sm:$0x7f] %vm125_vm14, %v260_v54 }
  0xb8   :  { %v274_v55 = vpop.permute.xlu0 %273 }
  0xb9   :  { %279 = vst.msk [vmem:[#allocation2 + $0x20] sm:$0xfe] %vm141_vm15, %v274_v55 }
  0xba   :  { %v276_v56 = vpop.permute.xlu1 %275 }
  0xbb   :  { %280 = vst.msk [vmem:[#allocation2 + $0x30] sm:$0xff] %vm143_vm0, %v276_v56 }
  0xbc   :  { %v293_v57 = vpop.permute.xlu0 %292 }
  0xbd   :  { %298 = vst.msk [vmem:[#allocation2 + $0x28] sm:$0xff] %vm143_vm0, %v293_v57 }
  0xbe   :  { %v295_v58 = vpop.permute.xlu1 %294 }
  0xbf   :  { %299 = vst.msk [vmem:[#allocation2 + $0x38] sm:$0x7f] %vm164_vm1, %v295_v58 }
  0xc0   :  { %v282_v59 = vpop.permute.xlu0 %281 }
  0xc1   :  { %287 = vst.msk [vmem:[#allocation2 + $0x20] sm:$0xff] %vm151_vm2, %v282_v59 }
  0xc2   :  { %v284_v60 = vpop.permute.xlu1 %283 }
  0xc3   :  { %288 = vst.msk [vmem:[#allocation2 + $0x30] sm:$0xff] %vm151_vm2, %v284_v60 }
  0xc4   :  { %v305_v61 = vld [vmem:[#allocation2 + $0x28] sm:$0xff] }
  0xc6   :  { %v307_v62 = vld [vmem:[#allocation2 + $0x38] sm:$0xff] }
  0xc7   :  { %v311_v63 = vpack.c.bf16 %v307_v62, %v305_v61 }
  0xc8   :  { %v304_v0 = vld [vmem:[#allocation2 + $0x20] sm:$0xff] }
  0xc9   :  { %552 = vmatprep.mubr.msk.bf16.mxu1 %vm408_vm3, %v311_v63 }
  0xca   :  { %v306_v1 = vld [vmem:[#allocation2 + $0x30] sm:$0xff] }
  0xcb   :  { %v310_v2 = vpack.c.bf16 %v306_v1, %v304_v0 }
  0xcd   :  { %456 = vmatmul.mubr.bf16.vlgmr.msra.gmra.mxu1 %v310_v2 }
 0x16d   :  { %v449_v3 = vpop.f32.mrf.mxu0 }
 0x16e   :  { %v502_v11 = vmul.f32 %v449_v3, %v449_v3 }
 0x16f   :  { %v451_v4 = vpop.f32.mrf.mxu0 }
 0x171   :  { %v452_v6 = vpop.f32.mrf.mxu0 }
 0x172   :  { %v564_v7 = vpack.c.bf16 %v452_v6, %v449_v3  ;;  %v503_v9 = vmul.f32 %v452_v6, %v452_v6  ;;  %v490_v12 = vadd.f32 %v452_v6, %v449_v3 }
 0x173   :  { %v454_v8 = vpop.f32.mrf.mxu0 }
 0x174   :  { %565 = vst [vmem:[%s918_s2] sm:$0xff] %v564_v7   ;;  %v506_v17 = vadd.f32 %v503_v9, %v502_v11 }
 0x18d   :  { %v457_v10 = vpop.f32.mrf.mxu1 }
 0x18e   :  { %v504_v15 = vmul.f32 %v457_v10, %v457_v10  ;;  %v491_v18 = vadd.f32 %v490_v12, %v457_v10 }
 0x18f   :  { %v459_v16 = vpop.f32.mrf.mxu1 }
 0x190   :  { %v507_v20 = vadd.f32 %v506_v17, %v504_v15 }
 0x191   :  { %v460_v19 = vpop.f32.mrf.mxu1 }
 0x192   :  { %v569_v5 = vpack.c.bf16 %v460_v19, %v457_v10  ;;  %v492_v13 = vadd.f32 %v491_v18, %v460_v19  ;;  %v505_v14 = vmul.f32 %v460_v19, %v460_v19 }
 0x193   :  { %v462_v21 = vpop.f32.mrf.mxu1 }
 0x194   :  { %571 = vst [vmem:[%s918_s2 + $0x8] sm:$0xff] %v569_v5   ;;  %v493_v22 = vrot.slane %v492_v13, 4  ;;  %v508_v23 = vadd.f32 %v507_v20, %v505_v14 }
 0x196   :  { %v494_v24 = vadd.f32 %v493_v22, %v492_v13  ;;  %v509_v25 = vrot.slane %v508_v23, 4 }
 0x198   :  { %v495_v26 = vrot.slane %v494_v24, 2  ;;  %v510_v27 = vadd.f32 %v509_v25, %v508_v23 }
 0x19a   :  { %v496_v28 = vadd.f32 %v495_v26, %v494_v24  ;;  %v511_v29 = vrot.slane %v510_v27, 2 }
 0x19c   :  { %v497_v30 = vrot.slane %v496_v28, 1  ;;  %v512_v31 = vadd.f32 %v511_v29, %v510_v27 }
 0x19e   :  { %v498_v33 = vadd.f32 %v497_v30, %v496_v28  ;;  %v513_v34 = vrot.slane %v512_v31, 1 }
 0x1a0   :  { %v499_v36 = vadd.f32 %v498_v33, %v489_v32  ;;  %v514_v37 = vadd.f32 %v513_v34, %v512_v31 }
 0x1a2   :  { %500 = vst [vmem:[%s917_s3] sm:$0x1] %v499_v36  ;;  %v515_v38 = vadd.f32 %v514_v37, %v501_v35 }
 0x1a4   :  { %516 = vst [vmem:[%s917_s3 + $0x1] sm:$0x1] %v515_v38 }

// kernel: conv_module_forward.4
= control target key start
LH: loop header
LB: loop body
LE: loop exit
PB: predicated region body
PF: predicated region fallthrough
CT: control target
= control target key end

     0   :  { %v602_v1 = vmov 0.0   ;;  %vm67_vm0 = vcmask 1046528   ;;  %vm57_vm1 = vcmask 1040384   ;;  %s747_s3 = inlined_call_operand.vmem [shape: bf16[384,128], index: 3, kind: input, shape index: {}]   ;;  %s748_s0 = inlined_call_operand.vmem [shape: bf16[2,16,128], index: 0, kind: input, shape index: {}]   ;;  %s749_s1 = inlined_call_operand.vmem [shape: f32[1,128], index: 1, kind: input, shape index: {}]   ;;  %s750_s2 = inlined_call_operand.vmem [shape: f32[1,128], index: 2, kind: input, shape index: {}]   ;;  %s751_s5 = inlined_call_operand.vmem [shape: f32[2,128], index: 5, kind: output, shape index: {1}]   ;;  %s752_s4 = inlined_call_operand.vmem [shape: bf16[2,16,128], index: 4, kind: output, shape index: {0}]  }
   0x1   :  { %v578_v0 = vld [vmem:[%s747_s3 + $0x78] sm:$0xff]   ;;  %75 = vst [vmem:[#allocation2 + $0x2f] sm:$0x1] %v602_v1  ;;  %54 = vst [vmem:[#allocation2] sm:$0x1] %v602_v1  ;;  %v581_v4 = vld [vmem:[%s747_s3 + $0x70] sm:$0xff]  }
   0x2   :  { %76 = vst [vmem:[#allocation2 + $0x30] sm:$0x1] %v602_v1  ;;  %95 = vst [vmem:[#allocation2 + $0x5f] sm:$0x1] %v602_v1  ;;  %v579_v2 = vld [vmem:[%s747_s3 + $0xb8] sm:$0xff]   ;;  %519 = vmatprep.subr.bf16.mxu0 %v578_v0  ;;  %v582_v5 = vld [vmem:[%s747_s3 + $0xb0] sm:$0xff]  }
   0x3   :  { %v580_v3 = vld [vmem:[%s747_s3 + $0x38] sm:$0xff]   ;;  %557 = vmatprep.subr.bf16.mxu1 %v579_v2  ;;  %v583_v6 = vld [vmem:[%s747_s3 + $0x30] sm:$0xff]   ;;  %v584_v7 = vld [vmem:[%s747_s3 + $0x68] sm:$0xff]   ;;  %428 = vst [vmem:[%s751_s5] sm:$0x3] %v602_v1 }
   0x4   :  { %520 = vmatpush3.bf16.msra.mxu0 %v580_v3  ;;  %558 = vmatpush3.bf16.msra.mxu1 %v579_v2  ;;  %v585_v8 = vld [vmem:[%s747_s3 + $0xa8] sm:$0xff]   ;;  %v587_v10 = vld [vmem:[%s747_s3 + $0x60] sm:$0xff]   ;;  %v590_v13 = vld [vmem:[%s747_s3 + $0x58] sm:$0xff]  }
   0x5   :  { %521 = vmatprep.subr.bf16.mxu0 %v581_v4  ;;  %559 = vmatprep.subr.bf16.mxu1 %v582_v5  ;;  %v586_v9 = vld [vmem:[%s747_s3 + $0x28] sm:$0xff]   ;;  %v588_v11 = vld [vmem:[%s747_s3 + $0xa0] sm:$0xff]   ;;  %v591_v14 = vld [vmem:[%s747_s3 + $0x98] sm:$0xff]  }
   0x6   :  { %v589_v12 = vld [vmem:[%s747_s3 + $0x20] sm:$0xff]   ;;  %v592_v15 = vld [vmem:[%s747_s3 + $0x18] sm:$0xff]   ;;  %v593_v16 = vld [vmem:[%s747_s3 + $0x50] sm:$0xff]  }
   0x7   :  { %v594_v17 = vld [vmem:[%s747_s3 + $0x90] sm:$0xff]   ;;  %v596_v19 = vld [vmem:[%s747_s3 + $0x48] sm:$0xff]   ;;  %v500_v22 = vld [vmem:[%s748_s0] sm:$0xff]  }
   0x8   :  { %522 = vmatpush3.bf16.msra.mxu0 %v583_v6  ;;  %560 = vmatpush3.bf16.msra.mxu1 %v582_v5  ;;  %v595_v18 = vld [vmem:[%s747_s3 + $0x10] sm:$0xff]   ;;  %v597_v20 = vld [vmem:[%s747_s3 + $0x88] sm:$0xff]   ;;  %v465_v24 = vld [vmem:[%s749_s1] ss:$0 sm:$0xff]  ;;  %v501_v27 = vunpack.c.l.bf16 %v500_v22  ;;  %v502_v28 = vunpack.c.h.bf16 %v500_v22 }
   0x9   :  { %523 = vmatprep.subr.bf16.mxu0 %v584_v7  ;;  %561 = vmatprep.subr.bf16.mxu1 %v585_v8  ;;  %v598_v21 = vld [vmem:[%s747_s3 + $0x8] sm:$0xff]   ;;  %v599_v25 = vld [vmem:[%s747_s3 + $0x40] sm:$0xff]  }
   0xa   :  { %v517_v23 = vld [vmem:[%s748_s0 + $0x8] sm:$0xff]   ;;  %v600_v26 = vld [vmem:[%s747_s3 + $0x80] sm:$0xff]   ;;  %v35_v32 = vmul.f32 %v501_v27, %v465_v24  ;;  %v36_v33 = vmul.f32 %v502_v28, %v465_v24 }
   0xb   :  { %v505_v29 = vunpack.c.l.bf16 %v517_v23  ;;  %v506_v30 = vunpack.c.h.bf16 %v517_v23  ;;  %v466_v31 = vld [vmem:[%s750_s2] ss:$0 sm:$0xff] }
   0xc   :  { %524 = vmatpush3.bf16.msra.mxu0 %v586_v9  ;;  %562 = vmatpush3.bf16.msra.mxu1 %v585_v8  ;;  %v601_v36 = vld [vmem:[%s747_s3] sm:$0xff]   ;;  %v46_v37 = vadd.f32 %v466_v31, %v35_v32  ;;  %v47_v38 = vadd.f32 %v466_v31, %v36_v33 }
   0xd   :  { %525 = vmatprep.subr.bf16.mxu0 %v587_v10  ;;  %563 = vmatprep.subr.bf16.mxu1 %v588_v11  ;;  %v37_v34 = vmul.f32 %v505_v29, %v465_v24  ;;  %v38_v35 = vmul.f32 %v506_v30, %v465_v24 }
   0xe   :  { %v50_v41 = vmax.f32 %v46_v37, 0.0  ;;  %v51_v42 = vmax.f32 %v47_v38, 0.0 }
   0xf   :  { %v48_v39 = vadd.f32 %v466_v31, %v37_v34  ;;  %v49_v40 = vadd.f32 %v466_v31, %v38_v35 }
  0x10   :  { %526 = vmatpush3.bf16.msra.mxu0 %v589_v12  ;;  %564 = vmatpush3.bf16.msra.mxu1 %v588_v11  ;;  %v109_v45 = vpack.c.bf16 %v51_v42, %v50_v41  ;;  %v68_v46 = vrot.slane %v50_v41, 1  ;;  %v69_v47 = vrot.slane %v51_v42, 1  ;;  %v58_v48 = vrot.slane %v50_v41, 7 }
  0x11   :  { %527 = vmatprep.subr.bf16.mxu0 %v590_v13  ;;  %565 = vmatprep.subr.bf16.mxu1 %v591_v14  ;;  %v52_v43 = vmax.f32 %v48_v39, 0.0  ;;  %v53_v44 = vmax.f32 %v49_v40, 0.0  ;;  %v59_v49 = vrot.slane %v51_v42, 7 }
  0x12   :  { %338 = vmatprep.mubr.bf16.mxu0 %v109_v45  ;;  %v70_v52 = vsel %vm67_vm0, %v68_v46, %v69_v47  ;;  %74 = vst [vmem:[#allocation2 + $0x28] sm:$0x7f] %v69_v47  ;;  %63 = vst [vmem:[#allocation2] sm:$0xfe] %v58_v48  ;;  %v441_v47 = vld [vmem:[%s751_s5 + $0x1] sm:$0x1] }
  0x13   :  { %v88_v50 = vrot.slane %v52_v43, 1  ;;  %v89_v51 = vrot.slane %v53_v44, 1  ;;  %v79_v53 = vrot.slane %v52_v43, 7  ;;  %v80_v54 = vrot.slane %v53_v44, 7 }
  0x14   :  { %528 = vmatpush3.bf16.msra.mxu0 %v592_v15  ;;  %566 = vmatpush3.bf16.msra.mxu1 %v591_v14  ;;  %v60_v55 = vsel %vm57_vm1, %v58_v48, %v59_v49  ;;  %v112_v60 = vpack.c.bf16 %v53_v44, %v52_v43  ;;  %v429_v44 = vld [vmem:[%s751_s5] sm:$0x1] }
  0x15   :  { %529 = vmatprep.subr.bf16.mxu0 %v593_v16  ;;  %567 = vmatprep.subr.bf16.mxu1 %v594_v17  ;;  %v90_v56 = vsel %vm67_vm0, %v88_v50, %v89_v51  ;;  %94 = vst [vmem:[#allocation2 + $0x58] sm:$0x7f] %v89_v51  ;;  %v81_v57 = vsel %vm57_vm1, %v79_v53, %v80_v54  ;;  %84 = vst [vmem:[#allocation2 + $0x30] sm:$0xfe] %v79_v53 }
  0x18   :  { %530 = vmatpush3.bf16.msra.mxu0 %v595_v18  ;;  %568 = vmatpush3.bf16.msra.mxu1 %v594_v17 }
  0x19   :  { %531 = vmatprep.subr.bf16.mxu0 %v596_v19  ;;  %569 = vmatprep.subr.bf16.mxu1 %v597_v20  ;;  %v101_v58 = vld [vmem:[#allocation2 + $0x28] sm:$0xff]  ;;  %v96_v59 = vld [vmem:[#allocation2] sm:$0xff] }
  0x1a   :  { %v110_v61 = vpack.c.bf16 %v101_v58, %v70_v52  ;;  %v108_v62 = vpack.c.bf16 %v60_v55, %v96_v59 }
  0x1c   :  { %532 = vmatpush3.bf16.msra.mxu0 %v598_v21  ;;  %570 = vmatpush3.bf16.msra.mxu1 %v597_v20  ;;  %v107_v63 = vld [vmem:[#allocation2 + $0x58] sm:$0xff]  ;;  %v102_v2 = vld [vmem:[#allocation2 + $0x30] sm:$0xff] }
  0x1d   :  { %533 = vmatprep.subr.bf16.mxu0 %v599_v25  ;;  %571 = vmatprep.subr.bf16.mxu1 %v600_v26  ;;  %v113_v0 = vpack.c.bf16 %v107_v63, %v90_v56  ;;  %v111_v3 = vpack.c.bf16 %v81_v57, %v102_v2 }
  0x1e   :  { %573 = vmatprep.mubr.bf16.mxu1 %v110_v61 }
  0x20   :  { %534 = vmatpush3.bf16.msra.mxu0 %v601_v36  ;;  %572 = vmatpush3.bf16.msra.mxu1 %v600_v26 }
  0x23   :  { %339 = vmatmul.mubr.bf16.vlgmr.msra.gmra.mxu0 %v108_v62  ;;  %574 = vmatmul.mubr.bf16.vlgmr.msra.gmra.mxu1 %v113_v0 }
  0x24   :  { %346 = vmatprep.mubr.bf16.mxu0 %v112_v60 }
  0x2b   :  { %347 = vmatmul.mubr.bf16.gmra.mxu0 %v111_v3 }
  0xe3   :  { %v535_v4 = vpop.f32.mrf.mxu0  ;;  %v575_v5 = vpop.f32.mrf.mxu1 }
  0xe5   :  { %v536_v6 = vpop.f32.mrf.mxu0  ;;  %v389_v7 = vpop.f32.mrf.mxu1 }
  0xe6   :  { %v537_v9 = vadd.f32 %v536_v6, %v535_v4 }
  0xe7   :  { %v538_v8 = vpop.f32.mrf.mxu0  ;;  %v576_v10 = vpop.f32.mrf.mxu1 }
  0xe8   :  { %v390_v15 = vadd.f32 %v537_v9, %v389_v7 }
  0xe9   :  { %v539_v11 = vpop.f32.mrf.mxu0  ;;  %v392_v13 = vpop.f32.mrf.mxu1 }
  0xea   :  { %v540_v12 = vadd.f32 %v539_v11, %v538_v8  ;;  %v442_v23 = vmul.f32 %v390_v15, %v390_v15 }
  0xeb   :  { %v541_v14 = vpop.f32.mrf.mxu0 }
  0xec   :  { %v393_v16 = vadd.f32 %v540_v12, %v392_v13 }
  0xed   :  { %v542_v17 = vpop.f32.mrf.mxu0 }
  0xee   :  { %v510_v18 = vpack.c.bf16 %v393_v16, %v390_v15  ;;  %v543_v19 = vadd.f32 %v542_v17, %v541_v14  ;;  %v443_v1 = vmul.f32 %v393_v16, %v393_v16  ;;  %v430_v24 = vadd.f32 %v393_v16, %v390_v15 }
  0xef   :  { %v544_v20 = vpop.f32.mrf.mxu0 }
  0xf0   :  { %511 = vst [vmem:[%s752_s4] sm:$0xff] %v510_v18   ;;  %v398_v21 = vadd.f32 %v575_v5, %v543_v19  ;;  %v446_v27 = vadd.f32 %v443_v1, %v442_v23 }
  0xf1   :  { %v545_v22 = vpop.f32.mrf.mxu0 }
  0xf2   :  { %v444_v25 = vmul.f32 %v398_v21, %v398_v21  ;;  %v546_v26 = vadd.f32 %v545_v22, %v544_v20  ;;  %v431_v28 = vadd.f32 %v430_v24, %v398_v21 }
  0xf4   :  { %v401_v29 = vadd.f32 %v576_v10, %v546_v26  ;;  %v447_v30 = vadd.f32 %v446_v27, %v444_v25 }
  0xf6   :  { %v515_v31 = vpack.c.bf16 %v401_v29, %v398_v21  ;;  %v432_v32 = vadd.f32 %v431_v28, %v401_v29  ;;  %v445_v33 = vmul.f32 %v401_v29, %v401_v29 }
  0xf8   :  { %518 = vst [vmem:[%s752_s4 + $0x8] sm:$0xff] %v515_v31   ;;  %v433_v34 = vrot.slane %v432_v32, 4  ;;  %v448_v35 = vadd.f32 %v447_v30, %v445_v33 }
  0xfa   :  { %v434_v36 = vadd.f32 %v433_v34, %v432_v32  ;;  %v449_v37 = vrot.slane %v448_v35, 4 }
  0xfc   :  { %v435_v38 = vrot.slane %v434_v36, 2  ;;  %v450_v39 = vadd.f32 %v449_v37, %v448_v35 }
  0xfe   :  { %v436_v40 = vadd.f32 %v435_v38, %v434_v36  ;;  %v451_v41 = vrot.slane %v450_v39, 2 }
 0x100   :  { %v437_v42 = vrot.slane %v436_v40, 1  ;;  %v452_v43 = vadd.f32 %v451_v41, %v450_v39 }
 0x102   :  { %v438_v45 = vadd.f32 %v437_v42, %v436_v40  ;;  %v453_v46 = vrot.slane %v452_v43, 1 }
 0x104   :  { %v439_v48 = vadd.f32 %v438_v45, %v429_v44  ;;  %v454_v49 = vadd.f32 %v453_v46, %v452_v43 }
 0x106   :  { %440 = vst [vmem:[%s751_s5] sm:$0x1] %v439_v48  ;;  %v455_v50 = vadd.f32 %v454_v49, %v441_v47 }
 0x108   :  { %456 = vst [vmem:[%s751_s5 + $0x1] sm:$0x1] %v455_v50 }

// kernel: conv_module_forward.5
= control target key start
LH: loop header
LB: loop body
LE: loop exit
PB: predicated region body
PF: predicated region fallthrough
CT: control target
= control target key end

     0   :  { %s321_s0 = inlined_call_operand.vmem [shape: bf16[2,16,128], index: 0, kind: input, shape index: {}]   ;;  %s322_s1 = inlined_call_operand.vmem [shape: f32[1,128], index: 1, kind: input, shape index: {}]   ;;  %s323_s2 = inlined_call_operand.vmem [shape: f32[1,128], index: 2, kind: input, shape index: {}]   ;;  %s324_s3 = inlined_call_operand.hbm [shape: f32[2,8,16,16], index: 3, kind: output, shape index: {}]  }
   0x1   :  { %v204_v0 = vld [vmem:[%s321_s0] sm:$0xff]   ;;  %v211_v4 = vld [vmem:[%s321_s0 + $0x8] sm:$0xff]  }
   0x2   :  { %v201_v1 = vld [vmem:[%s322_s1] ss:$0 sm:$0xff]  ;;  %v205_v2 = vunpack.c.l.bf16 %v204_v0  ;;  %v206_v3 = vunpack.c.h.bf16 %v204_v0 }
   0x3   :  { %8 = vsyncpa [#allocation3], 0  ;;  %v202_v5 = vld [vmem:[%s323_s2] ss:$0 sm:$0xff]  ;;  %v210_v6 = vunpack.c.h.bf16 %v211_v4  ;;  %v209_v7 = vunpack.c.l.bf16 %v211_v4  ;;  %vm49_vm0 = vcmask 130048   ;;  %s244_s0 = smov 96  }
   0x4   :  { %v30_v8 = vmul.f32 %v205_v2, %v201_v1  ;;  %v31_v9 = vmul.f32 %v206_v3, %v201_v1  ;;  %s245_s1 = smov 112   ;;  %s246_s2 = smov 80  }
   0x5   :  { %v33_v10 = vmul.f32 %v210_v6, %v201_v1  ;;  %v32_v11 = vmul.f32 %v209_v7, %v201_v1  ;;  %s247_s20 = smov 64   ;;  %s248_s21 = smov 48  }
   0x6   :  { %v41_v12 = vadd.f32 %v202_v5, %v30_v8  ;;  %v42_v13 = vadd.f32 %v202_v5, %v31_v9  ;;  %s249_s22 = smov 32   ;;  %s250_s23 = smov 16  }
   0x7   :  { %v44_v14 = vadd.f32 %v202_v5, %v33_v10  ;;  %v43_v15 = vadd.f32 %v202_v5, %v32_v11  ;;  %s251_s24 = smov [#allocation2]  }
   0x8   :  { %v45_v16 = vmax.f32 %v41_v12, 0.0  ;;  %v46_v17 = vmax.f32 %v42_v13, 0.0  ;;  %s190_s25 = sshll.u32 %s251_s24, 4  ;;  %s191_s25 = int_to_ptr.vmem [resolvable:$true] %s190_s25 }
   0x9   :  { %v48_v18 = vmax.f32 %v44_v14, 0.0  ;;  %v47_v19 = vmax.f32 %v43_v15, 0.0  ;;  %s222_s26 = scalar_lea.vmem %s191_s25, 4096  ;;  %p227_p1 = scmp.lt.s32.totalorder %s191_s25, %s191_s25 }
   0xa   :  { %63 = vrot.lane.b32.xlu1 %v45_v16, %s244_s0  ;;  %50 = vst.msk [vmem:[#allocation2] sm:$0xff] %vm49_vm0, %v45_v16  ;;  %54 = vrot.lane.b32.xlu0 %v45_v16, %s245_s1  ;;  %51 = vst.msk [vmem:[#allocation2 + $0x8] sm:$0xff] %vm49_vm0, %v46_v17  ;;  %p223_p0 = scmp.ne.s32.totalorder %s191_s25, %s222_s26  ;;  %p228_p2 = scmp.lt.s32.totalorder %s222_s26, %s222_s26 }
   0xb   :  { %119 = vst.msk [vmem:[#allocation2 + $0x88] sm:$0xff] %vm49_vm0, %v48_v18  ;;  %118 = vst.msk [vmem:[#allocation2 + $0x80] sm:$0xff] %vm49_vm0, %v47_v19 }
   0xc   :  { %p229_p3 = por %p228_p2, %p227_p1 }
   0xe   :  { %65 = vrot.lane.b32.xlu1 %v46_v17, %s244_s0  ;;  %56 = vrot.lane.b32.xlu0 %v46_v17, %s245_s1  ;;  %p230_p4 = pnand %p229_p3, %p223_p0 }
  0x12   :  { %74 = vrot.lane.b32.xlu1 %v46_v17, %s246_s2  ;;  %72 = vrot.lane.b32.xlu0 %v45_v16, %s246_s2 }
  0x16   :  { %83 = vrot.lane.b32.xlu1 %v46_v17, %s247_s20  ;;  %81 = vrot.lane.b32.xlu0 %v45_v16, %s247_s20 }
  0x1a   :  { %92 = vrot.lane.b32.xlu1 %v46_v17, %s248_s21  ;;  %90 = vrot.lane.b32.xlu0 %v45_v16, %s248_s21 }
  0x1e   :  { %101 = vrot.lane.b32.xlu1 %v46_v17, %s249_s22  ;;  %99 = vrot.lane.b32.xlu0 %v45_v16, %s249_s22 }
  0x22   :  { %110 = vrot.lane.b32.xlu1 %v46_v17, %s250_s23  ;;  %108 = vrot.lane.b32.xlu0 %v45_v16, %s250_s23 }
  0x26   :  { %124 = vrot.lane.b32.xlu1 %v48_v18, %s245_s1  ;;  %122 = vrot.lane.b32.xlu0 %v47_v19, %s245_s1 }
  0x2a   :  { %133 = vrot.lane.b32.xlu1 %v48_v18, %s244_s0  ;;  %131 = vrot.lane.b32.xlu0 %v47_v19, %s244_s0 }
  0x2e   :  { %142 = vrot.lane.b32.xlu1 %v48_v18, %s246_s2  ;;  %140 = vrot.lane.b32.xlu0 %v47_v19, %s246_s2 }
  0x32   :  { %151 = vrot.lane.b32.xlu1 %v48_v18, %s247_s20  ;;  %149 = vrot.lane.b32.xlu0 %v47_v19, %s247_s20 }
  0x36   :  { %160 = vrot.lane.b32.xlu1 %v48_v18, %s248_s21  ;;  %158 = vrot.lane.b32.xlu0 %v47_v19, %s248_s21 }
  0x3a   :  { %169 = vrot.lane.b32.xlu1 %v48_v18, %s249_s22  ;;  %167 = vrot.lane.b32.xlu0 %v47_v19, %s249_s22 }
  0x3e   :  { %178 = vrot.lane.b32.xlu1 %v48_v18, %s250_s23  ;;  %176 = vrot.lane.b32.xlu0 %v47_v19, %s250_s23 }
  0x7c   :  { %v64_v20 = vpop.permute.xlu1 %63  ;;  %v55_v21 = vpop.permute.xlu0 %54 }
  0x7d   :  { %70 = vst.msk [vmem:[#allocation2 + $0x20] sm:$0xff] %vm49_vm0, %v64_v20  ;;  %61 = vst.msk [vmem:[#allocation2 + $0x10] sm:$0xff] %vm49_vm0, %v55_v21 }
  0x80   :  { %v66_v22 = vpop.permute.xlu1 %65  ;;  %v57_v23 = vpop.permute.xlu0 %56 }
  0x81   :  { %71 = vst.msk [vmem:[#allocation2 + $0x28] sm:$0xff] %vm49_vm0, %v66_v22  ;;  %62 = vst.msk [vmem:[#allocation2 + $0x18] sm:$0xff] %vm49_vm0, %v57_v23 }
  0x84   :  { %v75_v24 = vpop.permute.xlu1 %74  ;;  %v73_v25 = vpop.permute.xlu0 %72 }
  0x85   :  { %80 = vst.msk [vmem:[#allocation2 + $0x38] sm:$0xff] %vm49_vm0, %v75_v24  ;;  %79 = vst.msk [vmem:[#allocation2 + $0x30] sm:$0xff] %vm49_vm0, %v73_v25 }
  0x88   :  { %v84_v26 = vpop.permute.xlu1 %83  ;;  %v82_v27 = vpop.permute.xlu0 %81 }
  0x89   :  { %89 = vst.msk [vmem:[#allocation2 + $0x48] sm:$0xff] %vm49_vm0, %v84_v26  ;;  %88 = vst.msk [vmem:[#allocation2 + $0x40] sm:$0xff] %vm49_vm0, %v82_v27 }
  0x8c   :  { %v93_v28 = vpop.permute.xlu1 %92  ;;  %v91_v29 = vpop.permute.xlu0 %90 }
  0x8d   :  { %98 = vst.msk [vmem:[#allocation2 + $0x58] sm:$0xff] %vm49_vm0, %v93_v28  ;;  %97 = vst.msk [vmem:[#allocation2 + $0x50] sm:$0xff] %vm49_vm0, %v91_v29 }
  0x90   :  { %v102_v30 = vpop.permute.xlu1 %101  ;;  %v100_v31 = vpop.permute.xlu0 %99 }
  0x91   :  { %107 = vst.msk [vmem:[#allocation2 + $0x68] sm:$0xff] %vm49_vm0, %v102_v30  ;;  %106 = vst.msk [vmem:[#allocation2 + $0x60] sm:$0xff] %vm49_vm0, %v100_v31 }
  0x94   :  { %v111_v32 = vpop.permute.xlu1 %110  ;;  %v109_v33 = vpop.permute.xlu0 %108 }
  0x95   :  { %116 = vst.msk [vmem:[#allocation2 + $0x78] sm:$0xff] %vm49_vm0, %v111_v32  ;;  %115 = vst.msk [vmem:[#allocation2 + $0x70] sm:$0xff] %vm49_vm0, %v109_v33 }
  0x98   :  { %v125_v34 = vpop.permute.xlu1 %124  ;;  %v123_v35 = vpop.permute.xlu0 %122 }
  0x99   :  { %130 = vst.msk [vmem:[#allocation2 + $0x98] sm:$0xff] %vm49_vm0, %v125_v34  ;;  %129 = vst.msk [vmem:[#allocation2 + $0x90] sm:$0xff] %vm49_vm0, %v123_v35 }
  0x9c   :  { %v134_v36 = vpop.permute.xlu1 %133  ;;  %v132_v37 = vpop.permute.xlu0 %131 }
  0x9d   :  { %139 = vst.msk [vmem:[#allocation2 + $0xa8] sm:$0xff] %vm49_vm0, %v134_v36  ;;  %138 = vst.msk [vmem:[#allocation2 + $0xa0] sm:$0xff] %vm49_vm0, %v132_v37 }
  0xa0   :  { %v143_v38 = vpop.permute.xlu1 %142  ;;  %v141_v39 = vpop.permute.xlu0 %140 }
  0xa1   :  { %148 = vst.msk [vmem:[#allocation2 + $0xb8] sm:$0xff] %vm49_vm0, %v143_v38  ;;  %147 = vst.msk [vmem:[#allocation2 + $0xb0] sm:$0xff] %vm49_vm0, %v141_v39 }
  0xa4   :  { %v152_v40 = vpop.permute.xlu1 %151  ;;  %v150_v41 = vpop.permute.xlu0 %149 }
  0xa5   :  { %157 = vst.msk [vmem:[#allocation2 + $0xc8] sm:$0xff] %vm49_vm0, %v152_v40  ;;  %156 = vst.msk [vmem:[#allocation2 + $0xc0] sm:$0xff] %vm49_vm0, %v150_v41 }
  0xa8   :  { %v161_v42 = vpop.permute.xlu1 %160  ;;  %v159_v43 = vpop.permute.xlu0 %158 }
  0xa9   :  { %166 = vst.msk [vmem:[#allocation2 + $0xd8] sm:$0xff] %vm49_vm0, %v161_v42  ;;  %165 = vst.msk [vmem:[#allocation2 + $0xd0] sm:$0xff] %vm49_vm0, %v159_v43 }
  0xac   :  { %v170_v44 = vpop.permute.xlu1 %169  ;;  %v168_v45 = vpop.permute.xlu0 %167 }
  0xad   :  { %175 = vst.msk [vmem:[#allocation2 + $0xe8] sm:$0xff] %vm49_vm0, %v170_v44  ;;  %174 = vst.msk [vmem:[#allocation2 + $0xe0] sm:$0xff] %vm49_vm0, %v168_v45 }
  0xb0   :  { %v179_v46 = vpop.permute.xlu1 %178  ;;  %v177_v47 = vpop.permute.xlu0 %176 }
  0xb1   :  { %184 = vst.msk [vmem:[#allocation2 + $0xf8] sm:$0xff] %vm49_vm0, %v179_v46  ;;  %183 = vst.msk [vmem:[#allocation2 + $0xf0] sm:$0xff] %vm49_vm0, %v177_v47 }
  0xb2   :  { %233 = shalt.err (!%p230_p4)
}
  0xb3   :  { %s252_s27 = smov 128   ;;  %s253_s28 = smov 8  }
  0xb4   :  { %196 = dma.vmem_to_hbm [thread:$0]  %s191_s25, 4096, %s324_s3, [#allocation3], %s252_s27, %s252_s27, %s253_s28  }
  0xb5   :  { %242 = dma.done.wait [#allocation3], 4096  }
  0xb6   :  { %243 = vsyncadd [#allocation3], 4294963200 }
  0xb7   :  { %200 = vsyncpa [#allocation3], 1 }

</bundles_post_ra>
